<compile_context>
chip_gen: v7x
topology: tpu7x:2x2x1
jax: 0.10.0
libtpu: 0.0.40
codegen_flags: <defaults>
</compile_context>

<pallas_src>
import numpy as np
import jax
import jax.numpy as jnp
from jax import lax
from jax.experimental import pallas as pl
from jax.experimental.pallas import tpu as pltpu


def _build_toeplitz_weights(wg, k, p, pmax, W, C, G):
    """Per-vertical-tap block-Toeplitz matmul weights for one grouped-conv branch.

    Returns T (numpy f32) of shape (k, Wp*C, W*C), Wp = W + 2*pmax, such that with
        slab_a[(n,h), wp*C + ci] = xpad[n, a + h, wp, ci]
    (xpad = x zero-padded by pmax on every spatial side) the grouped convolution is
        conv[(n,h), w*C + cout] = sum_ky  slab_{(pmax-p)+ky} @ T[ky].
    The group structure and horizontal taps live entirely inside T (host-built),
    so the kernel's output is lane-dense (W*C) with no relayout.
    """
    Cg = C // G
    Wp = W + 2 * pmax
    wg = np.asarray(wg, np.float32)                      # (G, ky, kx, c_in_l, c_out_l)
    T = np.zeros((k, Wp * C, W * C), np.float32)
    for ky in range(k):
        for kx in range(k):
            for w in range(W):
                wp = w + kx + (pmax - p)                 # always in [0, Wp)
                for g in range(G):
                    r0 = wp * C + g * Cg
                    c0 = w * C + g * Cg
                    T[ky, r0:r0 + Cg, c0:c0 + Cg] = wg[g, ky, kx]
    return T


def make_skconv_kernel(M, G, ksizes, pads, N, H, W, C, eps=1e-5):
    del G  # group structure is folded into the host-built Toeplitz weights
    WC = W * C
    pmax = max(pads)
    nslabs = 2 * pmax + 1
    inv_nhw = 1.0 / (N * H * W)

    def lane_fold(v):
        # Cyclic log2(W) roll+add over lanes: afterwards every lane w*C+c holds
        # sum_{w'} v[:, w'*C+c] (per-channel sum, already tiled over W).
        s = WC // 2
        while s >= C:
            v = v + pltpu.roll(v, s, axis=1)
            s //= 2
        return v

    def kernel(*refs):
        xp_ref = refs[0]                      # (N, Hp, Wp*C) bf16, shared padded input
        wt_refs = refs[1:1 + M]               # each (k_i, Wp*C, W*C) bf16
        (gamma_ref, beta_ref, fcw_ref, fcb_ref,
         fcsw_ref, fcsb_ref, o_ref) = refs[1 + M:]

        # One tiny upcast of the (small) padded input so the vertical-window slicing
        # and per-n concat happen on f32 values (robust layout path); the HBM->VMEM
        # DMA stays bf16.  Slabs are re-cast to bf16 only for the MXU (exact round trip).
        xpf = xp_ref[...].astype(jnp.float32)             # (N, Hp, Wp*C)
        slabs = []                                        # shared across branches
        for a in range(nslabs):
            parts = [xpf[n, a:a + H, :] for n in range(N)]          # (H, Wp*C) each
            s = parts[0] if N == 1 else jnp.concatenate(parts, axis=0)
            slabs.append(s.astype(jnp.bfloat16))                    # (N*H, Wp*C) bf16

        ys = []            # per-branch BN+ReLU features, (N*H, W*C) f32
        gap_rows = None    # (N, W*C): sum over branches of per-n row sums of y

        for i in range(M):
            k = ksizes[i]
            off = pmax - pads[i]

            # Grouped conv: k lane-dense Toeplitz matmuls, f32 accumulation.
            conv = jnp.dot(slabs[off], wt_refs[i][0],
                           preferred_element_type=jnp.float32)       # (N*H, W*C)
            for ky in range(1, k):
                conv = conv + jnp.dot(slabs[off + ky], wt_refs[i][ky],
                                      preferred_element_type=jnp.float32)
            # conv bias intentionally omitted: BN mean subtraction cancels it exactly.

            # BatchNorm (training-mode batch stats), lane-dense, two-pass variance.
            mu_t = lane_fold(jnp.sum(conv, axis=0, keepdims=True)) * inv_nhw  # (1, WC)
            d = conv - mu_t
            var_t = lane_fold(jnp.sum(d * d, axis=0, keepdims=True)) * inv_nhw
            scale_t = gamma_ref[i:i + 1, :] * lax.rsqrt(var_t + eps)          # (1, WC)
            y = jnp.maximum(d * scale_t + beta_ref[i:i + 1, :], 0.0)          # (NH, WC)
            ys.append(y)   # kept f32 (tiny here); store bf16 at production sizes

            # GAP partial: per-n sublane row-sums (H is a multiple of 8 -> clean slices).
            g = jnp.concatenate(
                [jnp.sum(y[n * H:(n + 1) * H, :], axis=0, keepdims=True)
                 for n in range(N)], axis=0)                                  # (N, WC)
            gap_rows = g if gap_rows is None else gap_rows + g

        # Squeeze-excite path. fcw_ref is the host-expanded (W*C, d) fc weight with
        # 1/(H*W) folded in, so fea_z comes straight from the lane-dense GAP rows.
        fea_z = jnp.dot(gap_rows, fcw_ref[...],
                        preferred_element_type=jnp.float32) + fcb_ref[...]    # (N, d)

        # Per-branch logits, pre-tiled over W lanes -> attention is lane-dense for free.
        logits = [jnp.dot(fea_z, fcsw_ref[i], preferred_element_type=jnp.float32)
                  + fcsb_ref[i:i + 1, :] for i in range(M)]                   # (N, WC)
        mx = logits[0]
        for i in range(1, M):
            mx = jnp.maximum(mx, logits[i])
        exps = [jnp.exp(l - mx) for l in logits]
        den = exps[0]
        for i in range(1, M):
            den = den + exps[i]
        inv_den = 1.0 / den
        atts = [e * inv_den for e in exps]                                    # (N, WC)

        # Weighted sum accumulated in local values; o_ref written exactly once.
        out_blocks = []
        for n in range(N):
            blk = None
            for i in range(M):
                contrib = ys[i][n * H:(n + 1) * H, :] * atts[i][n:n + 1, :]
                blk = contrib if blk is None else blk + contrib
            out_blocks.append(blk)
        o_ref[...] = out_blocks[0] if N == 1 else jnp.concatenate(out_blocks, axis=0)

    return kernel


def init_params(key, features, M, G, r, L):
    d = max(int(features / r), L)
    Cg = features // G
    keys = jax.random.split(key, M + 7)
    w_group = []
    for i in range(M):
        k = 3 + 2 * i
        w_group.append(0.1 * jax.random.normal(keys[i], (G, k, k, Cg, Cg), jnp.float32))
    conv_b = 0.1 * jax.random.normal(keys[M + 0], (M, features), jnp.float32)
    gamma = 1.0 + 0.1 * jax.random.normal(keys[M + 1], (M, features), jnp.float32)
    beta = 0.1 * jax.random.normal(keys[M + 2], (M, features), jnp.float32)
    fc_w = 0.1 * jax.random.normal(keys[M + 3], (features, d), jnp.float32)
    fc_b = 0.1 * jax.random.normal(keys[M + 4], (d,), jnp.float32)
    fcs_w = 0.1 * jax.random.normal(keys[M + 5], (M, d, features), jnp.float32)
    fcs_b = 0.1 * jax.random.normal(keys[M + 6], (M, features), jnp.float32)
    return dict(w_group=w_group, conv_b=conv_b, gamma=gamma, beta=beta,
                fc_w=fc_w, fc_b=fc_b, fcs_w=fcs_w, fcs_b=fcs_b)


def skconv_forward(x_nchw, params, M, G):
    x = jnp.transpose(x_nchw, (0, 2, 3, 1)).astype(jnp.float32)   # NCHW -> NHWC
    N, H, W, C = x.shape
    WC = W * C
    ksizes = tuple(3 + 2 * i for i in range(M))
    pads = tuple(1 + i for i in range(M))
    pmax = max(pads)
    Hp, Wp = H + 2 * pmax, W + 2 * pmax
    d = params["fc_w"].shape[1]
    assert (W & (W - 1)) == 0, "lane fold assumes power-of-two W"

    # Shared max-padded input, lane-dense (N, Hp, Wp*C), bf16 storage (halves DMA).
    xpad = jnp.pad(x, ((0, 0), (pmax, pmax), (pmax, pmax), (0, 0)))
    xp = xpad.reshape(N, Hp, Wp * C).astype(jnp.bfloat16)

    # Per-branch block-Toeplitz conv weights (k_i, Wp*C, W*C), bf16 for the MXU.
    wts = [jnp.asarray(
        _build_toeplitz_weights(params["w_group"][i], ksizes[i], pads[i], pmax, W, C, G),
        dtype=jnp.bfloat16) for i in range(M)]

    # Per-channel vectors pre-tiled over W lanes (done once host-side, f32).
    gamma_t = jnp.broadcast_to(params["gamma"][:, None, :], (M, W, C)).reshape(M, WC)
    beta_t = jnp.broadcast_to(params["beta"][:, None, :], (M, W, C)).reshape(M, WC)
    fcw_exp = (jnp.broadcast_to(params["fc_w"][None, :, :], (W, C, d)).reshape(WC, d)
               / float(H * W))
    fcb = params["fc_b"].reshape(1, d)
    fcsw_t = jnp.broadcast_to(params["fcs_w"][:, :, None, :],
                              (M, d, W, C)).reshape(M, d, WC)
    fcsb_t = jnp.broadcast_to(params["fcs_b"][:, None, :], (M, W, C)).reshape(M, WC)

    inputs = (xp, *wts, gamma_t, beta_t, fcw_exp, fcb, fcsw_t, fcsb_t)

    # VMEM budget from the actual buffers (+ headroom), clamped to ~80% of the
    # running generation's physical VMEM so it never exceeds v7x's 64 MiB per TC.
    io_bytes = sum(int(a.size) * a.dtype.itemsize for a in inputs)
    io_bytes += N * H * WC * 4                                       # output
    interm_bytes = (N * Hp * Wp * C * 4                              # f32 view of input
                    + (2 * pmax + 1) * N * H * Wp * C * 6            # slabs f32+bf16
                    + 4 * M * N * H * WC * 4                         # conv / d / y / slack
                    + (2 << 20))
    try:
        vmem_cap = int(pltpu.get_tpu_info().vmem_capacity_bytes)
    except Exception:
        vmem_cap = 64 * 2 ** 20          # conservative floor (v7x per-TC VMEM)
    vmem_limit = int(min(int(0.8 * vmem_cap),
                         max(32 * 2 ** 20, 4 * (io_bytes + interm_bytes))))

    kernel = make_skconv_kernel(M, G, ksizes, pads, N, H, W, C)
    out = pl.pallas_call(
        kernel,
        out_shape=jax.ShapeDtypeStruct((N * H, WC), jnp.float32),    # lane-dense store
        in_specs=[pl.BlockSpec(memory_space=pltpu.MemorySpace.VMEM)
                  for _ in inputs],
        out_specs=pl.BlockSpec(memory_space=pltpu.MemorySpace.VMEM),
        compiler_params=pltpu.CompilerParams(vmem_limit_bytes=vmem_limit),
    )(*inputs)
    out = out.reshape(N, H, W, C)
    return jnp.transpose(out, (0, 3, 1, 2))                          # NHWC -> NCHW


def skconv_reference(x_nchw, params, M, G):
    """Pure-JAX f32 reference (grouped conv via lax.conv_general_dilated)."""
    x = jnp.transpose(x_nchw, (0, 2, 3, 1)).astype(jnp.float32)
    N, H, W, C = x.shape
    Cg = C // G
    feas = []
    for i in range(M):
        k, p = 3 + 2 * i, 1 + i
        wg = params["w_group"][i]                                    # (G,k,k,Cg,Cg)
        rhs = jnp.transpose(wg, (1, 2, 3, 0, 4)).reshape(k, k, Cg, C)
        y = lax.conv_general_dilated(
            x, rhs, window_strides=(1, 1), padding=[(p, p), (p, p)],
            dimension_numbers=("NHWC", "HWIO", "NHWC"),
            feature_group_count=G, precision=lax.Precision.HIGHEST)
        y = y + params["conv_b"][i]                                  # cancelled by BN
        mu = y.mean(axis=(0, 1, 2), keepdims=True)
        var = ((y - mu) ** 2).mean(axis=(0, 1, 2), keepdims=True)
        y = (y - mu) * lax.rsqrt(var + 1e-5) * params["gamma"][i] + params["beta"][i]
        feas.append(jnp.maximum(y, 0.0))
    feas_st = jnp.stack(feas, axis=1)                                # (N,M,H,W,C)
    fea_U = feas_st.sum(axis=1)
    fea_s = fea_U.mean(axis=(1, 2))
    fea_z = fea_s @ params["fc_w"] + params["fc_b"]
    logits = jnp.stack([fea_z @ params["fcs_w"][i] + params["fcs_b"][i]
                        for i in range(M)], axis=1)                  # (N,M,C)
    att = jax.nn.softmax(logits, axis=1)
    fea_v = (feas_st * att[:, :, None, None, :]).sum(axis=1)
    return jnp.transpose(fea_v, (0, 3, 1, 2))


if __name__ == "__main__":
    # SKConv(features=8, WH=16, M=2, G=2, r=2, L=8) -> d = 8 ; W*C = 128 (lane dense)
    features, WH, M, G, r, L = 8, 16, 2, 2, 2, 8
    N = 2

    key = jax.random.PRNGKey(0)
    kx, kp = jax.random.split(key)
    x = jax.random.normal(kx, (N, features, WH, WH), jnp.float32)    # NCHW like PyTorch
    params = init_params(kp, features, M, G, r, L)

    out = skconv_forward(x, params, M, G)
    out = jax.block_until_ready(out)

    ref = skconv_reference(x, params, M, G)
    assert out.shape == ref.shape == (N, features, WH, WH)
    # Tolerance accounts for bf16 MXU conv inputs (f32 accumulation); BN variance is
    # now two-pass, so the only meaningful error source is the bf16 input rounding.
    assert jnp.allclose(out, ref, atol=5e-2, rtol=5e-2), float(jnp.max(jnp.abs(out - ref)))

    print("KERNEL_OK")
</pallas_src>

<mosaic_0001>
module attributes {stable_mosaic.version = 11 : i64} {
  func.func @kernel(%arg0: memref<2x20x160xbf16, #tpu.memory_space<vmem>>, %arg1: memref<3x160x128xbf16, #tpu.memory_space<vmem>>, %arg2: memref<5x160x128xbf16, #tpu.memory_space<vmem>>, %arg3: memref<2x128xf32, #tpu.memory_space<vmem>>, %arg4: memref<2x128xf32, #tpu.memory_space<vmem>>, %arg5: memref<128x8xf32, #tpu.memory_space<vmem>>, %arg6: memref<1x8xf32, #tpu.memory_space<vmem>>, %arg7: memref<2x8x128xf32, #tpu.memory_space<vmem>>, %arg8: memref<2x128xf32, #tpu.memory_space<vmem>>, %arg9: memref<32x128xf32, #tpu.memory_space<vmem>>) attributes {dimension_semantics = [], scalar_prefetch = 0 : i64, scratch_operands = 0 : i64, tpu.core_type = #tpu.core_type<tc>} {
    %c0 = arith.constant 0 : index
    %c0_0 = arith.constant 0 : index
    %c0_1 = arith.constant 0 : index
    %0 = vector.load %arg0[%c0, %c0_0, %c0_1] : memref<2x20x160xbf16, #tpu.memory_space<vmem>>, vector<2x20x160xbf16>
    %1 = arith.extf %0 : vector<2x20x160xbf16> to vector<2x20x160xf32>
    %2 = vector.extract_strided_slice %1 {offsets = [0, 0, 0], sizes = [1, 16, 160], strides = [1, 1, 1]} : vector<2x20x160xf32> to vector<1x16x160xf32>
    %3 = vector.shape_cast %2 : vector<1x16x160xf32> to vector<16x160xf32>
    %4 = vector.extract_strided_slice %1 {offsets = [1, 0, 0], sizes = [1, 16, 160], strides = [1, 1, 1]} : vector<2x20x160xf32> to vector<1x16x160xf32>
    %5 = vector.shape_cast %4 : vector<1x16x160xf32> to vector<16x160xf32>
    %6 = tpu.concatenate %3, %5 in 0 : vector<16x160xf32>, vector<16x160xf32> -> vector<32x160xf32>
    %7 = arith.truncf %6 : vector<32x160xf32> to vector<32x160xbf16>
    %8 = vector.extract_strided_slice %1 {offsets = [0, 1, 0], sizes = [1, 16, 160], strides = [1, 1, 1]} : vector<2x20x160xf32> to vector<1x16x160xf32>
    %9 = vector.shape_cast %8 : vector<1x16x160xf32> to vector<16x160xf32>
    %10 = vector.extract_strided_slice %1 {offsets = [1, 1, 0], sizes = [1, 16, 160], strides = [1, 1, 1]} : vector<2x20x160xf32> to vector<1x16x160xf32>
    %11 = vector.shape_cast %10 : vector<1x16x160xf32> to vector<16x160xf32>
    %12 = tpu.concatenate %9, %11 in 0 : vector<16x160xf32>, vector<16x160xf32> -> vector<32x160xf32>
    %13 = arith.truncf %12 : vector<32x160xf32> to vector<32x160xbf16>
    %14 = vector.extract_strided_slice %1 {offsets = [0, 2, 0], sizes = [1, 16, 160], strides = [1, 1, 1]} : vector<2x20x160xf32> to vector<1x16x160xf32>
    %15 = vector.shape_cast %14 : vector<1x16x160xf32> to vector<16x160xf32>
    %16 = vector.extract_strided_slice %1 {offsets = [1, 2, 0], sizes = [1, 16, 160], strides = [1, 1, 1]} : vector<2x20x160xf32> to vector<1x16x160xf32>
    %17 = vector.shape_cast %16 : vector<1x16x160xf32> to vector<16x160xf32>
    %18 = tpu.concatenate %15, %17 in 0 : vector<16x160xf32>, vector<16x160xf32> -> vector<32x160xf32>
    %19 = arith.truncf %18 : vector<32x160xf32> to vector<32x160xbf16>
    %20 = vector.extract_strided_slice %1 {offsets = [0, 3, 0], sizes = [1, 16, 160], strides = [1, 1, 1]} : vector<2x20x160xf32> to vector<1x16x160xf32>
    %21 = vector.shape_cast %20 : vector<1x16x160xf32> to vector<16x160xf32>
    %22 = vector.extract_strided_slice %1 {offsets = [1, 3, 0], sizes = [1, 16, 160], strides = [1, 1, 1]} : vector<2x20x160xf32> to vector<1x16x160xf32>
    %23 = vector.shape_cast %22 : vector<1x16x160xf32> to vector<16x160xf32>
    %24 = tpu.concatenate %21, %23 in 0 : vector<16x160xf32>, vector<16x160xf32> -> vector<32x160xf32>
    %25 = arith.truncf %24 : vector<32x160xf32> to vector<32x160xbf16>
    %26 = vector.extract_strided_slice %1 {offsets = [0, 4, 0], sizes = [1, 16, 160], strides = [1, 1, 1]} : vector<2x20x160xf32> to vector<1x16x160xf32>
    %27 = vector.shape_cast %26 : vector<1x16x160xf32> to vector<16x160xf32>
    %28 = vector.extract_strided_slice %1 {offsets = [1, 4, 0], sizes = [1, 16, 160], strides = [1, 1, 1]} : vector<2x20x160xf32> to vector<1x16x160xf32>
    %29 = vector.shape_cast %28 : vector<1x16x160xf32> to vector<16x160xf32>
    %30 = tpu.concatenate %27, %29 in 0 : vector<16x160xf32>, vector<16x160xf32> -> vector<32x160xf32>
    %31 = arith.truncf %30 : vector<32x160xf32> to vector<32x160xbf16>
    %c0_2 = arith.constant 0 : index
    %c0_3 = arith.constant 0 : index
    %c0_4 = arith.constant 0 : index
    %32 = vector.load %arg1[%c0_2, %c0_3, %c0_4] : memref<3x160x128xbf16, #tpu.memory_space<vmem>>, vector<1x160x128xbf16>
    %33 = vector.shape_cast %32 : vector<1x160x128xbf16> to vector<160x128xbf16>
    %cst = arith.constant dense<0.000000e+00> : vector<32x128xf32>
    %34 = tpu.matmul %13, %33, %cst {dimension_numbers = #tpu.dot_dimension_numbers<[1], [0], [0], [1], [0, 0, 1, 1], [], []>} : vector<32x160xbf16>, vector<160x128xbf16>, vector<32x128xf32> -> vector<32x128xf32>
    %c1 = arith.constant 1 : index
    %c0_5 = arith.constant 0 : index
    %c0_6 = arith.constant 0 : index
    %35 = vector.load %arg1[%c1, %c0_5, %c0_6] : memref<3x160x128xbf16, #tpu.memory_space<vmem>>, vector<1x160x128xbf16>
    %36 = vector.shape_cast %35 : vector<1x160x128xbf16> to vector<160x128xbf16>
    %cst_7 = arith.constant dense<0.000000e+00> : vector<32x128xf32>
    %37 = tpu.matmul %19, %36, %cst_7 {dimension_numbers = #tpu.dot_dimension_numbers<[1], [0], [0], [1], [0, 0, 1, 1], [], []>} : vector<32x160xbf16>, vector<160x128xbf16>, vector<32x128xf32> -> vector<32x128xf32>
    %38 = arith.addf %34, %37 : vector<32x128xf32>
    %c2 = arith.constant 2 : index
    %c0_8 = arith.constant 0 : index
    %c0_9 = arith.constant 0 : index
    %39 = vector.load %arg1[%c2, %c0_8, %c0_9] : memref<3x160x128xbf16, #tpu.memory_space<vmem>>, vector<1x160x128xbf16>
    %40 = vector.shape_cast %39 : vector<1x160x128xbf16> to vector<160x128xbf16>
    %cst_10 = arith.constant dense<0.000000e+00> : vector<32x128xf32>
    %41 = tpu.matmul %25, %40, %cst_10 {dimension_numbers = #tpu.dot_dimension_numbers<[1], [0], [0], [1], [0, 0, 1, 1], [], []>} : vector<32x160xbf16>, vector<160x128xbf16>, vector<32x128xf32> -> vector<32x128xf32>
    %42 = arith.addf %38, %41 : vector<32x128xf32>
    %cst_11 = arith.constant dense<0.000000e+00> : vector<128xf32>
    %43 = vector.multi_reduction <add>, %42, %cst_11 [0] : vector<32x128xf32> to vector<128xf32>
    %44 = vector.shape_cast %43 : vector<128xf32> to vector<1x128xf32>
    %c64_i32 = arith.constant 64 : i32
    %45 = tpu.dynamic_rotate %44 by %c64_i32 dim 1 : vector<1x128xf32>, i32 -> vector<1x128xf32>
    %46 = arith.addf %44, %45 : vector<1x128xf32>
    %c32_i32 = arith.constant 32 : i32
    %47 = tpu.dynamic_rotate %46 by %c32_i32 dim 1 : vector<1x128xf32>, i32 -> vector<1x128xf32>
    %48 = arith.addf %46, %47 : vector<1x128xf32>
    %c16_i32 = arith.constant 16 : i32
    %49 = tpu.dynamic_rotate %48 by %c16_i32 dim 1 : vector<1x128xf32>, i32 -> vector<1x128xf32>
    %50 = arith.addf %48, %49 : vector<1x128xf32>
    %c8_i32 = arith.constant 8 : i32
    %51 = tpu.dynamic_rotate %50 by %c8_i32 dim 1 : vector<1x128xf32>, i32 -> vector<1x128xf32>
    %52 = arith.addf %50, %51 : vector<1x128xf32>
    %cst_12 = arith.constant 0.001953125 : f32
    %53 = vector.broadcast %cst_12 : f32 to vector<1x128xf32>
    %54 = arith.mulf %52, %53 : vector<1x128xf32>
    %55 = vector.broadcast %54 : vector<1x128xf32> to vector<32x128xf32>
    %56 = arith.subf %42, %55 : vector<32x128xf32>
    %57 = arith.mulf %56, %56 : vector<32x128xf32>
    %cst_13 = arith.constant dense<0.000000e+00> : vector<128xf32>
    %58 = vector.multi_reduction <add>, %57, %cst_13 [0] : vector<32x128xf32> to vector<128xf32>
    %59 = vector.shape_cast %58 : vector<128xf32> to vector<1x128xf32>
    %c64_i32_14 = arith.constant 64 : i32
    %60 = tpu.dynamic_rotate %59 by %c64_i32_14 dim 1 : vector<1x128xf32>, i32 -> vector<1x128xf32>
    %61 = arith.addf %59, %60 : vector<1x128xf32>
    %c32_i32_15 = arith.constant 32 : i32
    %62 = tpu.dynamic_rotate %61 by %c32_i32_15 dim 1 : vector<1x128xf32>, i32 -> vector<1x128xf32>
    %63 = arith.addf %61, %62 : vector<1x128xf32>
    %c16_i32_16 = arith.constant 16 : i32
    %64 = tpu.dynamic_rotate %63 by %c16_i32_16 dim 1 : vector<1x128xf32>, i32 -> vector<1x128xf32>
    %65 = arith.addf %63, %64 : vector<1x128xf32>
    %c8_i32_17 = arith.constant 8 : i32
    %66 = tpu.dynamic_rotate %65 by %c8_i32_17 dim 1 : vector<1x128xf32>, i32 -> vector<1x128xf32>
    %67 = arith.addf %65, %66 : vector<1x128xf32>
    %cst_18 = arith.constant 0.001953125 : f32
    %68 = vector.broadcast %cst_18 : f32 to vector<1x128xf32>
    %69 = arith.mulf %67, %68 : vector<1x128xf32>
    %c0_19 = arith.constant 0 : index
    %c0_20 = arith.constant 0 : index
    %70 = vector.load %arg3[%c0_19, %c0_20] : memref<2x128xf32, #tpu.memory_space<vmem>>, vector<1x128xf32>
    %cst_21 = arith.constant 9.99999974E-6 : f32
    %71 = vector.broadcast %cst_21 : f32 to vector<1x128xf32>
    %72 = arith.addf %69, %71 : vector<1x128xf32>
    %73 = math.rsqrt %72 : vector<1x128xf32>
    %74 = arith.mulf %70, %73 : vector<1x128xf32>
    %75 = vector.broadcast %74 : vector<1x128xf32> to vector<32x128xf32>
    %76 = arith.mulf %56, %75 : vector<32x128xf32>
    %c0_22 = arith.constant 0 : index
    %c0_23 = arith.constant 0 : index
    %77 = vector.load %arg4[%c0_22, %c0_23] : memref<2x128xf32, #tpu.memory_space<vmem>>, vector<1x128xf32>
    %78 = vector.broadcast %77 : vector<1x128xf32> to vector<32x128xf32>
    %79 = arith.addf %76, %78 : vector<32x128xf32>
    %cst_24 = arith.constant 0.000000e+00 : f32
    %80 = vector.broadcast %cst_24 : f32 to vector<32x128xf32>
    %81 = arith.maximumf %79, %80 : vector<32x128xf32>
    %82 = vector.extract_strided_slice %81 {offsets = [0, 0], sizes = [16, 128], strides = [1, 1]} : vector<32x128xf32> to vector<16x128xf32>
    %cst_25 = arith.constant dense<0.000000e+00> : vector<128xf32>
    %83 = vector.multi_reduction <add>, %82, %cst_25 [0] : vector<16x128xf32> to vector<128xf32>
    %84 = vector.shape_cast %83 : vector<128xf32> to vector<1x128xf32>
    %85 = vector.extract_strided_slice %81 {offsets = [16, 0], sizes = [16, 128], strides = [1, 1]} : vector<32x128xf32> to vector<16x128xf32>
    %cst_26 = arith.constant dense<0.000000e+00> : vector<128xf32>
    %86 = vector.multi_reduction <add>, %85, %cst_26 [0] : vector<16x128xf32> to vector<128xf32>
    %87 = vector.shape_cast %86 : vector<128xf32> to vector<1x128xf32>
    %88 = tpu.concatenate %84, %87 in 0 : vector<1x128xf32>, vector<1x128xf32> -> vector<2x128xf32>
    %c0_27 = arith.constant 0 : index
    %c0_28 = arith.constant 0 : index
    %c0_29 = arith.constant 0 : index
    %89 = vector.load %arg2[%c0_27, %c0_28, %c0_29] : memref<5x160x128xbf16, #tpu.memory_space<vmem>>, vector<1x160x128xbf16>
    %90 = vector.shape_cast %89 : vector<1x160x128xbf16> to vector<160x128xbf16>
    %cst_30 = arith.constant dense<0.000000e+00> : vector<32x128xf32>
    %91 = tpu.matmul %7, %90, %cst_30 {dimension_numbers = #tpu.dot_dimension_numbers<[1], [0], [0], [1], [0, 0, 1, 1], [], []>} : vector<32x160xbf16>, vector<160x128xbf16>, vector<32x128xf32> -> vector<32x128xf32>
    %c1_31 = arith.constant 1 : index
    %c0_32 = arith.constant 0 : index
    %c0_33 = arith.constant 0 : index
    %92 = vector.load %arg2[%c1_31, %c0_32, %c0_33] : memref<5x160x128xbf16, #tpu.memory_space<vmem>>, vector<1x160x128xbf16>
    %93 = vector.shape_cast %92 : vector<1x160x128xbf16> to vector<160x128xbf16>
    %cst_34 = arith.constant dense<0.000000e+00> : vector<32x128xf32>
    %94 = tpu.matmul %13, %93, %cst_34 {dimension_numbers = #tpu.dot_dimension_numbers<[1], [0], [0], [1], [0, 0, 1, 1], [], []>} : vector<32x160xbf16>, vector<160x128xbf16>, vector<32x128xf32> -> vector<32x128xf32>
    %95 = arith.addf %91, %94 : vector<32x128xf32>
    %c2_35 = arith.constant 2 : index
    %c0_36 = arith.constant 0 : index
    %c0_37 = arith.constant 0 : index
    %96 = vector.load %arg2[%c2_35, %c0_36, %c0_37] : memref<5x160x128xbf16, #tpu.memory_space<vmem>>, vector<1x160x128xbf16>
    %97 = vector.shape_cast %96 : vector<1x160x128xbf16> to vector<160x128xbf16>
    %cst_38 = arith.constant dense<0.000000e+00> : vector<32x128xf32>
    %98 = tpu.matmul %19, %97, %cst_38 {dimension_numbers = #tpu.dot_dimension_numbers<[1], [0], [0], [1], [0, 0, 1, 1], [], []>} : vector<32x160xbf16>, vector<160x128xbf16>, vector<32x128xf32> -> vector<32x128xf32>
    %99 = arith.addf %95, %98 : vector<32x128xf32>
    %c3 = arith.constant 3 : index
    %c0_39 = arith.constant 0 : index
    %c0_40 = arith.constant 0 : index
    %100 = vector.load %arg2[%c3, %c0_39, %c0_40] : memref<5x160x128xbf16, #tpu.memory_space<vmem>>, vector<1x160x128xbf16>
    %101 = vector.shape_cast %100 : vector<1x160x128xbf16> to vector<160x128xbf16>
    %cst_41 = arith.constant dense<0.000000e+00> : vector<32x128xf32>
    %102 = tpu.matmul %25, %101, %cst_41 {dimension_numbers = #tpu.dot_dimension_numbers<[1], [0], [0], [1], [0, 0, 1, 1], [], []>} : vector<32x160xbf16>, vector<160x128xbf16>, vector<32x128xf32> -> vector<32x128xf32>
    %103 = arith.addf %99, %102 : vector<32x128xf32>
    %c4 = arith.constant 4 : index
    %c0_42 = arith.constant 0 : index
    %c0_43 = arith.constant 0 : index
    %104 = vector.load %arg2[%c4, %c0_42, %c0_43] : memref<5x160x128xbf16, #tpu.memory_space<vmem>>, vector<1x160x128xbf16>
    %105 = vector.shape_cast %104 : vector<1x160x128xbf16> to vector<160x128xbf16>
    %cst_44 = arith.constant dense<0.000000e+00> : vector<32x128xf32>
    %106 = tpu.matmul %31, %105, %cst_44 {dimension_numbers = #tpu.dot_dimension_numbers<[1], [0], [0], [1], [0, 0, 1, 1], [], []>} : vector<32x160xbf16>, vector<160x128xbf16>, vector<32x128xf32> -> vector<32x128xf32>
    %107 = arith.addf %103, %106 : vector<32x128xf32>
    %cst_45 = arith.constant dense<0.000000e+00> : vector<128xf32>
    %108 = vector.multi_reduction <add>, %107, %cst_45 [0] : vector<32x128xf32> to vector<128xf32>
    %109 = vector.shape_cast %108 : vector<128xf32> to vector<1x128xf32>
    %c64_i32_46 = arith.constant 64 : i32
    %110 = tpu.dynamic_rotate %109 by %c64_i32_46 dim 1 : vector<1x128xf32>, i32 -> vector<1x128xf32>
    %111 = arith.addf %109, %110 : vector<1x128xf32>
    %c32_i32_47 = arith.constant 32 : i32
    %112 = tpu.dynamic_rotate %111 by %c32_i32_47 dim 1 : vector<1x128xf32>, i32 -> vector<1x128xf32>
    %113 = arith.addf %111, %112 : vector<1x128xf32>
    %c16_i32_48 = arith.constant 16 : i32
    %114 = tpu.dynamic_rotate %113 by %c16_i32_48 dim 1 : vector<1x128xf32>, i32 -> vector<1x128xf32>
    %115 = arith.addf %113, %114 : vector<1x128xf32>
    %c8_i32_49 = arith.constant 8 : i32
    %116 = tpu.dynamic_rotate %115 by %c8_i32_49 dim 1 : vector<1x128xf32>, i32 -> vector<1x128xf32>
    %117 = arith.addf %115, %116 : vector<1x128xf32>
    %cst_50 = arith.constant 0.001953125 : f32
    %118 = vector.broadcast %cst_50 : f32 to vector<1x128xf32>
    %119 = arith.mulf %117, %118 : vector<1x128xf32>
    %120 = vector.broadcast %119 : vector<1x128xf32> to vector<32x128xf32>
    %121 = arith.subf %107, %120 : vector<32x128xf32>
    %122 = arith.mulf %121, %121 : vector<32x128xf32>
    %cst_51 = arith.constant dense<0.000000e+00> : vector<128xf32>
    %123 = vector.multi_reduction <add>, %122, %cst_51 [0] : vector<32x128xf32> to vector<128xf32>
    %124 = vector.shape_cast %123 : vector<128xf32> to vector<1x128xf32>
    %c64_i32_52 = arith.constant 64 : i32
    %125 = tpu.dynamic_rotate %124 by %c64_i32_52 dim 1 : vector<1x128xf32>, i32 -> vector<1x128xf32>
    %126 = arith.addf %124, %125 : vector<1x128xf32>
    %c32_i32_53 = arith.constant 32 : i32
    %127 = tpu.dynamic_rotate %126 by %c32_i32_53 dim 1 : vector<1x128xf32>, i32 -> vector<1x128xf32>
    %128 = arith.addf %126, %127 : vector<1x128xf32>
    %c16_i32_54 = arith.constant 16 : i32
    %129 = tpu.dynamic_rotate %128 by %c16_i32_54 dim 1 : vector<1x128xf32>, i32 -> vector<1x128xf32>
    %130 = arith.addf %128, %129 : vector<1x128xf32>
    %c8_i32_55 = arith.constant 8 : i32
    %131 = tpu.dynamic_rotate %130 by %c8_i32_55 dim 1 : vector<1x128xf32>, i32 -> vector<1x128xf32>
    %132 = arith.addf %130, %131 : vector<1x128xf32>
    %cst_56 = arith.constant 0.001953125 : f32
    %133 = vector.broadcast %cst_56 : f32 to vector<1x128xf32>
    %134 = arith.mulf %132, %133 : vector<1x128xf32>
    %c1_57 = arith.constant 1 : index
    %c0_58 = arith.constant 0 : index
    %135 = vector.load %arg3[%c1_57, %c0_58] : memref<2x128xf32, #tpu.memory_space<vmem>>, vector<1x128xf32>
    %cst_59 = arith.constant 9.99999974E-6 : f32
    %136 = vector.broadcast %cst_59 : f32 to vector<1x128xf32>
    %137 = arith.addf %134, %136 : vector<1x128xf32>
    %138 = math.rsqrt %137 : vector<1x128xf32>
    %139 = arith.mulf %135, %138 : vector<1x128xf32>
    %140 = vector.broadcast %139 : vector<1x128xf32> to vector<32x128xf32>
    %141 = arith.mulf %121, %140 : vector<32x128xf32>
    %c1_60 = arith.constant 1 : index
    %c0_61 = arith.constant 0 : index
    %142 = vector.load %arg4[%c1_60, %c0_61] : memref<2x128xf32, #tpu.memory_space<vmem>>, vector<1x128xf32>
    %143 = vector.broadcast %142 : vector<1x128xf32> to vector<32x128xf32>
    %144 = arith.addf %141, %143 : vector<32x128xf32>
    %cst_62 = arith.constant 0.000000e+00 : f32
    %145 = vector.broadcast %cst_62 : f32 to vector<32x128xf32>
    %146 = arith.maximumf %144, %145 : vector<32x128xf32>
    %147 = vector.extract_strided_slice %146 {offsets = [0, 0], sizes = [16, 128], strides = [1, 1]} : vector<32x128xf32> to vector<16x128xf32>
    %cst_63 = arith.constant dense<0.000000e+00> : vector<128xf32>
    %148 = vector.multi_reduction <add>, %147, %cst_63 [0] : vector<16x128xf32> to vector<128xf32>
    %149 = vector.shape_cast %148 : vector<128xf32> to vector<1x128xf32>
    %150 = vector.extract_strided_slice %146 {offsets = [16, 0], sizes = [16, 128], strides = [1, 1]} : vector<32x128xf32> to vector<16x128xf32>
    %cst_64 = arith.constant dense<0.000000e+00> : vector<128xf32>
    %151 = vector.multi_reduction <add>, %150, %cst_64 [0] : vector<16x128xf32> to vector<128xf32>
    %152 = vector.shape_cast %151 : vector<128xf32> to vector<1x128xf32>
    %153 = tpu.concatenate %149, %152 in 0 : vector<1x128xf32>, vector<1x128xf32> -> vector<2x128xf32>
    %154 = arith.addf %88, %153 : vector<2x128xf32>
    %c0_65 = arith.constant 0 : index
    %c0_66 = arith.constant 0 : index
    %155 = vector.load %arg5[%c0_65, %c0_66] : memref<128x8xf32, #tpu.memory_space<vmem>>, vector<128x8xf32>
    %cst_67 = arith.constant dense<0.000000e+00> : vector<2x8xf32>
    %156 = tpu.matmul %154, %155, %cst_67 {dimension_numbers = #tpu.dot_dimension_numbers<[1], [0], [0], [1], [0, 0, 1, 1], [], []>} : vector<2x128xf32>, vector<128x8xf32>, vector<2x8xf32> -> vector<2x8xf32>
    %c0_68 = arith.constant 0 : index
    %c0_69 = arith.constant 0 : index
    %157 = vector.load %arg6[%c0_68, %c0_69] : memref<1x8xf32, #tpu.memory_space<vmem>>, vector<1x8xf32>
    %158 = vector.broadcast %157 : vector<1x8xf32> to vector<2x8xf32>
    %159 = arith.addf %156, %158 : vector<2x8xf32>
    %c0_70 = arith.constant 0 : index
    %c0_71 = arith.constant 0 : index
    %c0_72 = arith.constant 0 : index
    %160 = vector.load %arg7[%c0_70, %c0_71, %c0_72] : memref<2x8x128xf32, #tpu.memory_space<vmem>>, vector<1x8x128xf32>
    %161 = vector.shape_cast %160 : vector<1x8x128xf32> to vector<8x128xf32>
    %cst_73 = arith.constant dense<0.000000e+00> : vector<2x128xf32>
    %162 = tpu.matmul %159, %161, %cst_73 {dimension_numbers = #tpu.dot_dimension_numbers<[1], [0], [0], [1], [0, 0, 1, 1], [], []>} : vector<2x8xf32>, vector<8x128xf32>, vector<2x128xf32> -> vector<2x128xf32>
    %c0_74 = arith.constant 0 : index
    %c0_75 = arith.constant 0 : index
    %163 = vector.load %arg8[%c0_74, %c0_75] : memref<2x128xf32, #tpu.memory_space<vmem>>, vector<1x128xf32>
    %164 = vector.broadcast %163 : vector<1x128xf32> to vector<2x128xf32>
    %165 = arith.addf %162, %164 : vector<2x128xf32>
    %c1_76 = arith.constant 1 : index
    %c0_77 = arith.constant 0 : index
    %c0_78 = arith.constant 0 : index
    %166 = vector.load %arg7[%c1_76, %c0_77, %c0_78] : memref<2x8x128xf32, #tpu.memory_space<vmem>>, vector<1x8x128xf32>
    %167 = vector.shape_cast %166 : vector<1x8x128xf32> to vector<8x128xf32>
    %cst_79 = arith.constant dense<0.000000e+00> : vector<2x128xf32>
    %168 = tpu.matmul %159, %167, %cst_79 {dimension_numbers = #tpu.dot_dimension_numbers<[1], [0], [0], [1], [0, 0, 1, 1], [], []>} : vector<2x8xf32>, vector<8x128xf32>, vector<2x128xf32> -> vector<2x128xf32>
    %c1_80 = arith.constant 1 : index
    %c0_81 = arith.constant 0 : index
    %169 = vector.load %arg8[%c1_80, %c0_81] : memref<2x128xf32, #tpu.memory_space<vmem>>, vector<1x128xf32>
    %170 = vector.broadcast %169 : vector<1x128xf32> to vector<2x128xf32>
    %171 = arith.addf %168, %170 : vector<2x128xf32>
    %172 = arith.maximumf %165, %171 : vector<2x128xf32>
    %173 = arith.subf %165, %172 : vector<2x128xf32>
    %174 = math.exp %173 : vector<2x128xf32>
    %175 = arith.subf %171, %172 : vector<2x128xf32>
    %176 = math.exp %175 : vector<2x128xf32>
    %177 = arith.addf %174, %176 : vector<2x128xf32>
    %cst_82 = arith.constant 1.000000e+00 : f32
    %178 = vector.broadcast %cst_82 : f32 to vector<2x128xf32>
    %179 = arith.divf %178, %177 : vector<2x128xf32>
    %180 = arith.mulf %174, %179 : vector<2x128xf32>
    %181 = arith.mulf %176, %179 : vector<2x128xf32>
    %182 = vector.extract_strided_slice %81 {offsets = [0, 0], sizes = [16, 128], strides = [1, 1]} : vector<32x128xf32> to vector<16x128xf32>
    %183 = vector.extract_strided_slice %180 {offsets = [0, 0], sizes = [1, 128], strides = [1, 1]} : vector<2x128xf32> to vector<1x128xf32>
    %184 = vector.broadcast %183 : vector<1x128xf32> to vector<16x128xf32>
    %185 = arith.mulf %182, %184 : vector<16x128xf32>
    %186 = vector.extract_strided_slice %146 {offsets = [0, 0], sizes = [16, 128], strides = [1, 1]} : vector<32x128xf32> to vector<16x128xf32>
    %187 = vector.extract_strided_slice %181 {offsets = [0, 0], sizes = [1, 128], strides = [1, 1]} : vector<2x128xf32> to vector<1x128xf32>
    %188 = vector.broadcast %187 : vector<1x128xf32> to vector<16x128xf32>
    %189 = arith.mulf %186, %188 : vector<16x128xf32>
    %190 = arith.addf %185, %189 : vector<16x128xf32>
    %191 = vector.extract_strided_slice %81 {offsets = [16, 0], sizes = [16, 128], strides = [1, 1]} : vector<32x128xf32> to vector<16x128xf32>
    %192 = vector.extract_strided_slice %180 {offsets = [1, 0], sizes = [1, 128], strides = [1, 1]} : vector<2x128xf32> to vector<1x128xf32>
    %193 = vector.broadcast %192 : vector<1x128xf32> to vector<16x128xf32>
    %194 = arith.mulf %191, %193 : vector<16x128xf32>
    %195 = vector.extract_strided_slice %146 {offsets = [16, 0], sizes = [16, 128], strides = [1, 1]} : vector<32x128xf32> to vector<16x128xf32>
    %196 = vector.extract_strided_slice %181 {offsets = [1, 0], sizes = [1, 128], strides = [1, 1]} : vector<2x128xf32> to vector<1x128xf32>
    %197 = vector.broadcast %196 : vector<1x128xf32> to vector<16x128xf32>
    %198 = arith.mulf %195, %197 : vector<16x128xf32>
    %199 = arith.addf %194, %198 : vector<16x128xf32>
    %200 = tpu.concatenate %190, %199 in 0 : vector<16x128xf32>, vector<16x128xf32> -> vector<32x128xf32>
    %c0_83 = arith.constant 0 : index
    %c0_84 = arith.constant 0 : index
    %201 = vector.load %arg9[%c0_83, %c0_84] : memref<32x128xf32, #tpu.memory_space<vmem>>, vector<32x128xf32>
    tpu.vector_store %arg9[%c0_83, %c0_84], %200 {strides = array<i32>} : memref<32x128xf32, #tpu.memory_space<vmem>>, vector<32x128xf32>,
    return
  }
}

</mosaic_0001>

<bundles_post_ra>
// kernel: tpu_custom_call.1
= control target key start
LH: loop header
LB: loop body
LE: loop exit
PB: predicated region body
PF: predicated region fallthrough
CT: control target
= control target key end

     0   :  { %14 = vsyncpa [#allocation3], 0  ;;  %s2901_s0 = inlined_call_operand.vmem [shape: bf16[2,20,160], index: 0, kind: input, shape index: {}]   ;;  %s2902_s1 = inlined_call_operand.hbm [shape: bf16[3,160,128], index: 1, kind: input, shape index: {}]   ;;  %s2903_s2 = inlined_call_operand.hbm [shape: bf16[5,160,128], index: 2, kind: input, shape index: {}]   ;;  %s2904_s3 = inlined_call_operand.vmem [shape: f32[2,128], index: 3, kind: input, shape index: {}]   ;;  %s2905_s4 = inlined_call_operand.vmem [shape: f32[2,128], index: 4, kind: input, shape index: {}]   ;;  %s2906_s5 = inlined_call_operand.vmem [shape: f32[128,8], index: 5, kind: input, shape index: {}]   ;;  %s2907_s6 = inlined_call_operand.vmem [shape: f32[1,8], index: 6, kind: input, shape index: {}]   ;;  %s2908_s7 = inlined_call_operand.vmem [shape: f32[2,8,128], index: 7, kind: input, shape index: {}]   ;;  %s2909_s8 = inlined_call_operand.vmem [shape: f32[2,128], index: 8, kind: input, shape index: {}]   ;;  %s2910_s9 = inlined_call_operand.hbm [shape: f32[32,128], index: 9, kind: output, shape index: {}]  }
   0x1   :  { %15 = vsyncpa [#allocation6], 0 }
   0x2   :  { %16 = vsyncpa [#allocation4], 0  ;;  %s2240_s30 = smov [#allocation2]   ;;  %s2168_s13 = scalar_lea.hbm %s2902_s1, 3840 }
   0x3   :  { %s24_s10 = sshll.u32 %s2240_s30, 4  ;;  %p2169_p0 = scmp.ne.s32.totalorder %s2902_s1, %s2168_s13  ;;  %s25_s10 = int_to_ptr.vmem [resolvable:$true] %s24_s10 }
   0x4   :  { %p2172_p1 = scmp.lt.u32.totalorder %s2168_s13, %s2902_s1 }
   0x6   :  { %p2174_p2 = pnand %p2172_p1, %p2169_p0 }
   0x8   :  { %2177 = shalt.err (!%p2174_p2)
}
   0x9   :  { %s2178_s18 = scalar_lea.vmem %s25_s10, 3840  ;;  %p2183_p4 = scmp.lt.s32.totalorder %s25_s10, %s25_s10 }
   0xa   :  { %p2179_p3 = scmp.ne.s32.totalorder %s25_s10, %s2178_s18  ;;  %p2184_p5 = scmp.lt.s32.totalorder %s2178_s18, %s2178_s18 }
   0xc   :  { %p2185_p6 = por %p2184_p5, %p2183_p4 }
   0xe   :  { %p2186_p7 = pnand %p2185_p6, %p2179_p3 }
  0x10   :  { %2189 = shalt.err (!%p2186_p7)
}
  0x11   :  { %s2241_s19 = smov 64   ;;  %s2242_s20 = smov 4  }
  0x12   :  { %30 = dma.hbm_to_vmem [thread:$0]  %s2902_s1, 3840, %s25_s10, [#allocation3], %s2241_s19, %s2241_s19, %s2242_s20  }
  0x13   :  { %s2243_s23 = smov [#allocation5]   ;;  %s2190_s27 = scalar_lea.hbm %s2903_s2, 6400 }
  0x14   :  { %s36_s24 = sshll.u32 %s2243_s23, 4  ;;  %p2191_p8 = scmp.ne.s32.totalorder %s2903_s2, %s2190_s27  ;;  %s37_s24 = int_to_ptr.vmem [resolvable:$true] %s36_s24 }
  0x15   :  { %p2194_p9 = scmp.lt.u32.totalorder %s2190_s27, %s2903_s2 }
  0x17   :  { %p2196_p10 = pnand %p2194_p9, %p2191_p8 }
  0x19   :  { %2199 = shalt.err (!%p2196_p10)
}
  0x1a   :  { %s2200_s12 = scalar_lea.vmem %s37_s24, 6400  ;;  %p2205_p12 = scmp.lt.s32.totalorder %s37_s24, %s37_s24 }
  0x1b   :  { %p2201_p11 = scmp.ne.s32.totalorder %s37_s24, %s2200_s12  ;;  %p2206_p13 = scmp.lt.s32.totalorder %s2200_s12, %s2200_s12 }
  0x1d   :  { %p2207_p0 = por %p2206_p13, %p2205_p12 }
  0x1f   :  { %p2208_p1 = pnand %p2207_p0, %p2201_p11 }
  0x21   :  { %2211 = shalt.err (!%p2208_p1)
}
  0x22   :  { %42 = dma.hbm_to_vmem [thread:$0]  %s2903_s2, 6400, %s37_s24, [#allocation6], %s2241_s19, %s2241_s19, %s2242_s20  }
  0x23   :  { %2234 = dma.done.wait [#allocation3], 3840  }
  0x24   :  { %2235 = vsyncadd [#allocation3], 4294963456 }
  0x25   :  { %2236 = dma.done.wait [#allocation6], 6400  }
  0x26   :  { %2237 = vsyncadd [#allocation6], 4294960896  ;;  %v2244_v0 = vmov 0   ;;  %v2074_v1 = vld [vmem:[#allocation2 + $0x50] sm:$0xff]   ;;  %v2076_v3 = vld [vmem:[#allocation2 + $0x58] sm:$0xff]   ;;  %vm329_vm0 = vcmask 261120  }
  0x27   :  { %336 = vmatprep.subr.bf16.mxu0 %v2244_v0  ;;  %953 = vmatprep.subr.bf16.mxu1 %v2244_v0  ;;  %v2075_v2 = vld [vmem:[#allocation5] sm:$0xff]   ;;  %v2077_v4 = vld [vmem:[#allocation5 + $0x8] sm:$0xff]   ;;  %v2078_v5 = vld [vmem:[#allocation2 + $0x60] sm:$0xff]   ;;  %vm129_vm1 = vcmask 1045504   ;;  %vm162_vm2 = vcmask 1044480   ;;  %vm90_vm3 = vcmask 1046528  }
  0x28   :  { %337 = vmatpush1.bf16.msra.mxu0 %v2074_v1  ;;  %954 = vmatpush1.bf16.msra.mxu1 %v2075_v2  ;;  %v2079_v6 = vld [vmem:[#allocation5 + $0x10] sm:$0xff]   ;;  %v2080_v7 = vld [vmem:[#allocation2 + $0x68] sm:$0xff]   ;;  %v2082_v9 = vld [vmem:[#allocation2 + $0x70] sm:$0xff]   ;;  %vm195_vm4 = vcmask 1043456   ;;  %s2246_s25 = smov 16   ;;  %s2247_s26 = smov 8  }
  0x29   :  { %338 = vmatprep.subr.bf16.mxu0 %v2244_v0  ;;  %955 = vmatprep.subr.bf16.mxu1 %v2244_v0  ;;  %v2081_v8 = vld [vmem:[#allocation5 + $0x18] sm:$0xff]   ;;  %v2083_v10 = vld [vmem:[#allocation5 + $0x20] sm:$0xff]   ;;  %v2084_v11 = vld [vmem:[#allocation2 + $0x78] sm:$0xff]   ;;  %vm2249_vm5 = vmmov 0   ;;  %vm735_vm6 = vcmask 1040384   ;;  %vm1606_vm7 = vcmask 64512  }
  0x2a   :  { %v2085_v12 = vld [vmem:[#allocation5 + $0x28] sm:$0xff]   ;;  %v2346_v13 = vld [vmem:[%s2901_s0] sm:$0xff]  ;;  %v2351_v14 = vld [vmem:[%s2901_s0 + $0x8] sm:$0xff] }
  0x2b   :  { %v64_v15 = vld [vmem:[%s2901_s0 + $0x10] sm:$0x33]  ;;  %v2357_v16 = vunpack.c.h.bf16 %v2346_v13  ;;  %v2360_v17 = vunpack.c.h.bf16 %v2351_v14  ;;  %v2086_v19 = vld [vmem:[#allocation2 + $0x80] sm:$0xff]   ;;  %v1820_v20 = vcombine.high %v2346_v13, %v2351_v14  ;;  %v2088_v28 = vld [vmem:[#allocation2 + $0x88] sm:$0xff]   ;;  %v2379_v30 = vunpack.c.l.bf16 %v2346_v13 }
  0x2c   :  { %339 = vmatpush1.bf16.msra.mxu0 %v2076_v3  ;;  %956 = vmatpush1.bf16.msra.mxu1 %v2077_v4  ;;  %v2362_v18 = vunpack.c.h.bf16 %v64_v15  ;;  %v2087_v21 = vld [vmem:[#allocation5 + $0x30] sm:$0xff]   ;;  %v2372_v25 = vunpack.c.l.bf16 %v64_v15  ;;  %v2382_v31 = vunpack.c.l.bf16 %v2351_v14  ;;  %v2089_v32 = vld [vmem:[#allocation5 + $0x38] sm:$0xff]   ;;  %v2090_v33 = vld [vmem:[#allocation2 + $0x90] sm:$0xff]   ;;  %v1819_v47 = vcombine.low %v2346_v13, %v2351_v14 }
  0x2d   :  { %340 = vmatprep.subr.bf16.mxu0 %v2244_v0  ;;  %957 = vmatprep.subr.bf16.mxu1 %v2244_v0  ;;  %v133_v22 = vrot.slane %v2357_v16, 2  ;;  %v134_v23 = vrot.slane %v2360_v17, 2  ;;  %v130_v35 = vrot.slane %v2379_v30, 2  ;;  %v2091_v37 = vld [vmem:[#allocation5 + $0x40] sm:$0xff]   ;;  %v166_v38 = vrot.slane %v2357_v16, 3  ;;  %v2092_v40 = vld [vmem:[#allocation2 + $0x98] sm:$0xff]  }
  0x2e   :  { %v138_v24 = vrot.slane %v2362_v18, 2  ;;  %1882 = vmatprep.mubr.msk.bf16.mxu1 %vm329_vm0, %v1820_v20  ;;  %v136_v34 = vrot.slane %v2372_v25, 2  ;;  %v131_v36 = vrot.slane %v2382_v31, 2  ;;  %v167_v39 = vrot.slane %v2360_v17, 3  ;;  %v2093_v44 = vld [vmem:[#allocation5 + $0x48] sm:$0xff]   ;;  %v2095_v51 = vld [vmem:[#allocation2] sm:$0xff]  }
  0x2f   :  { %v135_v26 = vsel %vm129_vm1, %v133_v22, %v134_v23  ;;  %v171_v43 = vrot.slane %v2362_v18, 3  ;;  %v163_v46 = vrot.slane %v2379_v30, 3  ;;  %v164_v49 = vrot.slane %v2382_v31, 3  ;;  %v65_v52 = vld [vmem:[%s2901_s0 + $0x18] sm:$0xff]  ;;  %v66_v56 = vld [vmem:[%s2901_s0 + $0x20] sm:$0xff]  ;;  %v2097_v62 = vld [vmem:[#allocation5 + $0xa0] sm:$0xff]  }
  0x30   :  { %341 = vmatpush1.bf16.msra.mxu0 %v2078_v5  ;;  %958 = vmatpush1.bf16.msra.mxu1 %v2079_v6  ;;  %v139_v27 = vsel %vm129_vm1, %v134_v23, %v138_v24  ;;  %v132_v41 = vsel %vm129_vm1, %v130_v35, %v131_v36  ;;  %v137_v42 = vsel %vm129_vm1, %v131_v36, %v136_v34  ;;  %v94_v53 = vrot.slane %v2357_v16, 1  ;;  %v67_v57 = vld [vmem:[%s2901_s0 + $0x28] sm:$0x33]  ;;  %v2099_v13 = vld [vmem:[#allocation5 + $0xa8] sm:$0xff]   ;;  %s2245_s0 = smov 32  }
  0x31   :  { %342 = vmatprep.subr.bf16.mxu0 %v2244_v0  ;;  %959 = vmatprep.subr.bf16.mxu1 %v2244_v0  ;;  %v2376_v29 = vpack.c.bf16 %v139_v27, %v135_v26  ;;  %v168_v45 = vsel %vm162_vm2, %v166_v38, %v167_v39  ;;  %v172_v48 = vsel %vm162_vm2, %v167_v39, %v171_v43  ;;  %v169_v55 = vrot.slane %v2372_v25, 3  ;;  %v2102_v35 = vld [vmem:[#allocation2 + $0x18] sm:$0xff]   ;;  %v2104_v39 = vld [vmem:[#allocation2 + $0x20] sm:$0xff]  }
  0x32   :  { %v2406_v50 = vpack.c.bf16 %v137_v42, %v132_v41  ;;  %v2412_v54 = vpack.c.bf16 %v172_v48, %v168_v45  ;;  %v2421_v58 = vunpack.c.h.bf16 %v65_v52  ;;  %v2423_v59 = vunpack.c.l.bf16 %v65_v52  ;;  %v2105_v41 = vld [vmem:[#allocation5 + $0xc0] sm:$0xff]  }
  0x33   :  { %1833 = vmatprep.mubr.msk.bf16.mxu0 %vm329_vm0, %v2376_v29  ;;  %v95_v60 = vrot.slane %v2360_v17, 1  ;;  %v165_v61 = vsel %vm162_vm2, %v163_v46, %v164_v49  ;;  %v2428_v63 = vunpack.c.h.bf16 %v66_v56  ;;  %v2430_v1 = vunpack.c.h.bf16 %v67_v57 }
  0x34   :  { %343 = vmatpush1.bf16.msra.mxu0 %v2080_v7  ;;  %960 = vmatpush1.bf16.msra.mxu1 %v2081_v8  ;;  %v2432_v2 = vunpack.c.l.bf16 %v66_v56  ;;  %v99_v3 = vrot.slane %v2362_v18, 1  ;;  %v147_v4 = vrot.slane %v2421_v58, 2  ;;  %v1822_v5 = vcombine.high %v65_v52, %v66_v56  ;;  %v2098_v8 = vld [vmem:[#allocation2 + $0x8] sm:$0xff]  }
  0x35   :  { %344 = vmatprep.subr.bf16.mxu0 %v2244_v0  ;;  %961 = vmatprep.subr.bf16.mxu1 %v2244_v0  ;;  %v2437_v6 = vunpack.c.l.bf16 %v67_v57  ;;  %v144_v7 = vrot.slane %v2423_v59, 2  ;;  %v96_v26 = vsel %vm90_vm3, %v94_v53, %v95_v60  ;;  %v180_v36 = vrot.slane %v2421_v58, 3  ;;  %v2107_v57 = vld [vmem:[#allocation5 + $0xc8] sm:$0xff]  }
  0x36   :  { %v100_v27 = vsel %vm90_vm3, %v95_v60, %v99_v3  ;;  %v181_v38 = vrot.slane %v2428_v63, 3  ;;  %v177_v43 = vrot.slane %v2423_v59, 3  ;;  %v178_v45 = vrot.slane %v2432_v2, 3 }
  0x37   :  { %v150_v14 = vrot.slane %v2437_v6, 2  ;;  %v2465_v34 = vpack.c.bf16 %v100_v27, %v96_v26  ;;  %v199_v46 = vrot.slane %v2357_v16, 4  ;;  %v183_v48 = vrot.slane %v2437_v6, 3  ;;  %v2106_v16 = vld [vmem:[#allocation2 + $0x28] sm:$0xff]  }
  0x38   :  { %345 = vmatpush1.bf16.msra.mxu0 %v2082_v9  ;;  %962 = vmatpush1.bf16.msra.mxu1 %v2083_v10  ;;  %v148_v9 = vrot.slane %v2428_v63, 2  ;;  %v152_v10 = vrot.slane %v2430_v1, 2  ;;  %v182_v42 = vsel %vm162_vm2, %v180_v36, %v181_v38  ;;  %v213_v3 = vrot.slane %v2421_v58, 4 }
  0x39   :  { %346 = vmatprep.subr.bf16.mxu0 %v2244_v0  ;;  %963 = vmatprep.subr.bf16.mxu1 %v2244_v0  ;;  %v97_v36 = vrot.slane %v2372_v25, 1 }
  0x3a   :  { %v153_v20 = vsel %vm129_vm1, %v148_v9, %v152_v10  ;;  %v218_v10 = vrot.slane %v2430_v1, 4 }
  0x3c   :  { %347 = vmatpush1.bf16.msra.mxu0 %v2084_v11  ;;  %964 = vmatpush1.bf16.msra.mxu1 %v2085_v12  ;;  %v145_v11 = vrot.slane %v2432_v2, 2  ;;  %v170_v12 = vsel %vm162_vm2, %v164_v49, %v169_v55  ;;  %v200_v49 = vrot.slane %v2360_v17, 4  ;;  %v197_v17 = vrot.slane %v2382_v31, 4 }
  0x3d   :  { %348 = vmatprep.subr.bf16.mxu0 %v2244_v0  ;;  %965 = vmatprep.subr.bf16.mxu1 %v2244_v0  ;;  %v2446_v15 = vpack.c.bf16 %v170_v12, %v165_v61  ;;  %v202_v61 = vrot.slane %v2372_v25, 4  ;;  %v210_v12 = vrot.slane %v2423_v59, 4  ;;  %v2117_v25 = vld [vmem:[#allocation5 + $0xe8] sm:$0xff]  }
  0x3e   :  { %v151_v23 = vsel %vm129_vm1, %v145_v11, %v150_v14  ;;  %v2494_v55 = vsel %vm195_vm4, %v199_v46, %v200_v49  ;;  %v211_v14 = vrot.slane %v2432_v2, 4  ;;  %v2119_v46 = vld [vmem:[#allocation5 + $0xf0] sm:$0xff]  }
  0x40   :  { %349 = vmatpush1.bf16.msra.mxu0 %v2086_v19  ;;  %966 = vmatpush1.bf16.msra.mxu1 %v2087_v21  ;;  %v149_v19 = vsel %vm129_vm1, %v147_v4, %v148_v9  ;;  %v146_v21 = vsel %vm129_vm1, %v144_v7, %v145_v11  ;;  %v2108_v4 = vld [vmem:[#allocation2 + $0x30] sm:$0xff]   ;;  %v214_v7 = vrot.slane %v2428_v63, 4  ;;  %v2532_v26 = vsel %vm195_vm4, %v210_v12, %v211_v14  ;;  %v2138_v12 = vld [vmem:[#allocation5 + $0x50] sm:$0xff]  }
  0x41   :  { %350 = vmatprep.subr.bf16.mxu0 %v2244_v0  ;;  %967 = vmatprep.subr.bf16.mxu1 %v2244_v0  ;;  %v2453_v22 = vpack.c.bf16 %v153_v20, %v149_v19  ;;  %v2457_v24 = vpack.c.bf16 %v151_v23, %v146_v21  ;;  %v2110_v19 = vld [vmem:[#allocation2 + $0x38] sm:$0xff]   ;;  %v216_v21 = vrot.slane %v2437_v6, 4  ;;  %v2111_v23 = vld [vmem:[#allocation5 + $0xd8] sm:$0xff]  }
  0x42   :  { %v2520_v11 = vsel %vm195_vm4, %v213_v3, %v214_v7  ;;  %v2133_v3 = vld [vmem:[#allocation5 + $0x128] sm:$0xff]  }
  0x43   :  { %v2536_v27 = vsel %vm195_vm4, %v211_v14, %v216_v21  ;;  %v2139_v14 = vld [vmem:[#allocation5 + $0x140] sm:$0xff]   ;;  %v2141_v21 = vld [vmem:[#allocation5 + $0x148] sm:$0xff]  }
  0x44   :  { %351 = vmatpush1.bf16.msra.mxu0 %v2088_v28  ;;  %968 = vmatpush1.bf16.msra.mxu1 %v2089_v32  ;;  %v2100_v28 = vld [vmem:[#allocation2 + $0x10] sm:$0xff]   ;;  %v1821_v32 = vcombine.low %v65_v52, %v66_v56  ;;  %v204_v52 = vrot.slane %v2362_v18, 4  ;;  %v196_v56 = vrot.slane %v2379_v30, 4 }
  0x45   :  { %352 = vmatprep.subr.bf16.mxu0 %v2244_v0  ;;  %969 = vmatprep.subr.bf16.mxu1 %v2244_v0 }
  0x46   :  { %v2499_v60 = vsel %vm195_vm4, %v200_v49, %v204_v52  ;;  %v2124_v52 = vld [vmem:[#allocation2 + $0xb8] sm:$0xff]  }
  0x47   :  { %v225_v18 = vpack.c.bf16 %v2499_v60, %v2494_v55  ;;  %v2151_v55 = vld [vmem:[#allocation5 + $0x170] sm:$0xff]   ;;  %v2152_v60 = vld [vmem:[#allocation5 + $0x88] sm:$0xff]  }
  0x48   :  { %353 = vmatpush1.bf16.msra.mxu0 %v2090_v33  ;;  %970 = vmatpush1.bf16.msra.mxu1 %v2091_v37  ;;  %v2101_v33 = vld [vmem:[#allocation5 + $0xb0] sm:$0xff]   ;;  %v2103_v37 = vld [vmem:[#allocation5 + $0xb8] sm:$0xff]  }
  0x49   :  { %354 = vmatprep.subr.bf16.mxu0 %v2244_v0  ;;  %971 = vmatprep.subr.bf16.mxu1 %v2244_v0 }
  0x4c   :  { %355 = vmatpush1.bf16.msra.mxu0 %v2092_v40  ;;  %972 = vmatpush1.bf16.msra.mxu1 %v2093_v44  ;;  %v185_v40 = vrot.slane %v2430_v1, 3 }
  0x4d   :  { %451 = vmatprep.subr.bf16.mxu0 %v2244_v0  ;;  %1083 = vmatprep.subr.bf16.mxu1 %v2244_v0 }
  0x4e   :  { %v186_v44 = vsel %vm162_vm2, %v181_v38, %v185_v40  ;;  %v114_v38 = vrot.slane %v2421_v58, 1 }
  0x4f   :  { %369 = vmatmul.mubr.bf16.vlgmr.msra.gmra.mrb[0].mxu0 %v2406_v50  ;;  %986 = vmatmul.mubr.bf16.vlgmr.msra.gmra.mrb[0].mxu1 %v1819_v47  ;;  %v2483_v47 = vpack.c.bf16 %v186_v44, %v182_v42  ;;  %v112_v44 = vrot.slane %v2432_v2, 1 }
  0x50   :  { %452 = vmatpush1.bf16.msra.mxu0 %v2095_v51  ;;  %1084 = vmatpush1.bf16.msra.mxu1 %v2097_v62  ;;  %v184_v51 = vsel %vm162_vm2, %v178_v45, %v183_v48  ;;  %v2507_v62 = vsel %vm195_vm4, %v196_v56, %v197_v17  ;;  %v2127_v56 = vld [vmem:[#allocation5 + $0x110] sm:$0xff]  }
  0x51   :  { %453 = vmatprep.subr.bf16.mxu0 %v2244_v0  ;;  %1085 = vmatprep.subr.bf16.mxu1 %v2244_v0 }
  0x52   :  { %1883 = vmatprep.mubr.msk.bf16.mxu1 %vm329_vm0, %v1822_v5  ;;  %1834 = vmatprep.mubr.msk.bf16.mxu0 %vm329_vm0, %v2453_v22  ;;  %v2511_v5 = vsel %vm195_vm4, %v197_v17, %v202_v61  ;;  %v2130_v17 = vld [vmem:[#allocation2 + $0xd0] sm:$0xff]   ;;  %v2132_v61 = vld [vmem:[#allocation2 + $0xd8] sm:$0xff]  }
  0x53   :  { %v224_v9 = vpack.c.bf16 %v2511_v5, %v2507_v62 }
  0x54   :  { %454 = vmatpush1.bf16.msra.mxu0 %v2098_v8  ;;  %1086 = vmatpush1.bf16.msra.mxu1 %v2099_v13  ;;  %v2109_v8 = vld [vmem:[#allocation5 + $0xd0] sm:$0xff]   ;;  %v2524_v13 = vsel %vm195_vm4, %v214_v7, %v218_v10  ;;  %v2137_v10 = vld [vmem:[#allocation5 + $0x138] sm:$0xff]  }
  0x55   :  { %455 = vmatprep.subr.bf16.mxu0 %v2244_v0  ;;  %1087 = vmatprep.subr.bf16.mxu1 %v2244_v0  ;;  %v227_v20 = vpack.c.bf16 %v2524_v13, %v2520_v11  ;;  %v2135_v7 = vld [vmem:[#allocation5 + $0x130] sm:$0xff]  }
  0x57   :  { %377 = vmatmul.mubr.bf16.gmra.mrb[4].mxu0 %v2457_v24  ;;  %994 = vmatmul.mubr.bf16.gmra.mrb[4].mxu1 %v1821_v32  ;;  %v92_v32 = vrot.slane %v2382_v31, 1  ;;  %v2116_v31 = vld [vmem:[#allocation2 + $0x48] sm:$0xff]  }
  0x58   :  { %456 = vmatpush1.bf16.msra.mxu0 %v2100_v28  ;;  %1088 = vmatpush1.bf16.msra.mxu1 %v2101_v33  ;;  %v91_v28 = vrot.slane %v2379_v30, 1  ;;  %v226_v33 = vpack.c.bf16 %v2536_v27, %v2532_v26  ;;  %v119_v30 = vrot.slane %v2430_v1, 1  ;;  %v111_v1 = vrot.slane %v2423_v59, 1 }
  0x59   :  { %457 = vmatprep.subr.bf16.mxu0 %v2244_v0  ;;  %1089 = vmatprep.subr.bf16.mxu1 %v2244_v0 }
  0x5a   :  { %1845 = vmatprep.mubr.msk.bf16.mxu0 %vm329_vm0, %v2465_v34  ;;  %1894 = vmatprep.mubr.msk.bf16.mxu1 %vm329_vm0, %v2376_v29  ;;  %v179_v29 = vsel %vm162_vm2, %v177_v43, %v178_v45  ;;  %v93_v40 = vsel %vm90_vm3, %v91_v28, %v92_v32  ;;  %v2118_v43 = vld [vmem:[#allocation2 + $0xa0] sm:$0xff]   ;;  %v117_v45 = vrot.slane %v2437_v6, 1  ;;  %v113_v59 = vsel %vm90_vm3, %v111_v1, %v112_v44  ;;  %v2121_v6 = vld [vmem:[#allocation5 + $0xf8] sm:$0xff]  }
  0x5b   :  { %v2491_v53 = vpack.c.bf16 %v184_v51, %v179_v29  ;;  %v2120_v29 = vld [vmem:[#allocation2 + $0xa8] sm:$0xff]   ;;  %v2123_v51 = vld [vmem:[#allocation5 + $0x100] sm:$0xff]   ;;  %v2143_v28 = vld [vmem:[#allocation5 + $0x150] sm:$0xff]  }
  0x5c   :  { %458 = vmatpush1.bf16.msra.mxu0 %v2102_v35  ;;  %1090 = vmatpush1.bf16.msra.mxu1 %v2103_v37  ;;  %v2113_v35 = vld [vmem:[#allocation2 + $0x40] sm:$0xff]   ;;  %v2115_v37 = vld [vmem:[#allocation5 + $0xe0] sm:$0xff]   ;;  %v118_v2 = vsel %vm90_vm3, %v112_v44, %v117_v45 }
  0x5d   :  { %459 = vmatprep.subr.bf16.mxu0 %v2244_v0  ;;  %1091 = vmatprep.subr.bf16.mxu1 %v2244_v0  ;;  %v2571_v49 = vpack.c.bf16 %v118_v2, %v113_v59 }
  0x60   :  { %460 = vmatpush1.bf16.msra.mxu0 %v2104_v39  ;;  %1092 = vmatpush1.bf16.msra.mxu1 %v2105_v41  ;;  %v115_v39 = vrot.slane %v2428_v63, 1  ;;  %v98_v41 = vsel %vm90_vm3, %v92_v32, %v97_v36  ;;  %v2145_v32 = vld [vmem:[#allocation5 + $0x158] sm:$0xff]   ;;  %v2149_v36 = vld [vmem:[#allocation5 + $0x168] sm:$0xff]  }
  0x61   :  { %461 = vmatprep.subr.bf16.mxu0 %v2244_v0  ;;  %1093 = vmatprep.subr.bf16.mxu1 %v2244_v0  ;;  %v2552_v42 = vpack.c.bf16 %v98_v41, %v93_v40 }
  0x62   :  { %v116_v58 = vsel %vm90_vm3, %v114_v38, %v115_v39  ;;  %v120_v63 = vsel %vm90_vm3, %v115_v39, %v119_v30  ;;  %v2155_v38 = vld [vmem:[#allocation5 + $0x180] sm:$0xff]   ;;  %v2156_v39 = vld [vmem:[#allocation5 + $0x98] sm:$0xff]   ;;  %v2157_v30 = vld [vmem:[#allocation5 + $0x188] sm:$0xff]  }
  0x63   :  { %v2561_v48 = vpack.c.bf16 %v120_v63, %v116_v58 }
  0x64   :  { %462 = vmatpush1.bf16.msra.mxu0 %v2106_v16  ;;  %1094 = vmatpush1.bf16.msra.mxu1 %v2107_v57  ;;  %v2125_v16 = vld [vmem:[#allocation5 + $0x108] sm:$0xff]   ;;  %v2129_v57 = vld [vmem:[#allocation5 + $0x118] sm:$0xff]  }
  0x65   :  { %463 = vmatprep.subr.bf16.mxu0 %v2244_v0  ;;  %1095 = vmatprep.subr.bf16.mxu1 %v2244_v0 }
  0x68   :  { %464 = vmatpush1.bf16.msra.mxu0 %v2108_v4  ;;  %1096 = vmatpush1.bf16.msra.mxu1 %v2109_v8  ;;  %v2134_v4 = vld [vmem:[#allocation2 + $0xe0] sm:$0xff]   ;;  %v2136_v8 = vld [vmem:[#allocation2 + $0xe8] sm:$0xff]  }
  0x69   :  { %465 = vmatprep.subr.bf16.mxu0 %v2244_v0  ;;  %1097 = vmatprep.subr.bf16.mxu1 %v2244_v0 }
  0x6c   :  { %466 = vmatpush1.bf16.msra.mxu0 %v2110_v19  ;;  %1098 = vmatpush1.bf16.msra.mxu1 %v2111_v23  ;;  %v2140_v19 = vld [vmem:[#allocation5 + $0x58] sm:$0xff]   ;;  %v2142_v23 = vld [vmem:[#allocation5 + $0x60] sm:$0xff]  }
  0x6d   :  { %467 = vmatprep.subr.bf16.mxu0 %v2244_v0  ;;  %1099 = vmatprep.subr.bf16.mxu1 %v2244_v0 }
  0x70   :  { %468 = vmatpush1.bf16.msra.mxu0 %v2113_v35  ;;  %1100 = vmatpush1.bf16.msra.mxu1 %v2115_v37  ;;  %v2148_v35 = vld [vmem:[#allocation5 + $0x78] sm:$0xff]   ;;  %v2154_v37 = vld [vmem:[#allocation5 + $0x90] sm:$0xff]  }
  0x71   :  { %469 = vmatprep.subr.bf16.mxu0 %v2244_v0  ;;  %1101 = vmatprep.subr.bf16.mxu1 %v2244_v0 }
  0x74   :  { %470 = vmatpush1.bf16.msra.mxu0 %v2116_v31  ;;  %1102 = vmatpush1.bf16.msra.mxu1 %v2117_v25 }
  0x75   :  { %587 = vmatprep.subr.bf16.mxu0 %v2244_v0  ;;  %1217 = vmatprep.subr.bf16.mxu1 %v2244_v0 }
  0x77   :  { %484 = vmatmul.mubr.bf16.vlgmr.msra.gmra.mrb[0].mxu0 %v2552_v42  ;;  %1116 = vmatmul.mubr.bf16.vlgmr.msra.gmra.mrb[0].mxu1 %v2406_v50  ;;  %v2122_v50 = vld [vmem:[#allocation2 + $0xb0] sm:$0xff]  }
  0x78   :  { %588 = vmatpush1.bf16.msra.mxu0 %v2118_v43  ;;  %1218 = vmatpush1.bf16.msra.mxu1 %v2119_v46 }
  0x79   :  { %589 = vmatprep.subr.bf16.mxu0 %v2244_v0  ;;  %1219 = vmatprep.subr.bf16.mxu1 %v2244_v0 }
  0x7a   :  { %1846 = vmatprep.mubr.msk.bf16.mxu0 %vm329_vm0, %v2561_v48  ;;  %1895 = vmatprep.mubr.msk.bf16.mxu1 %vm329_vm0, %v2453_v22  ;;  %v2126_v22 = vld [vmem:[#allocation2 + $0xc0] sm:$0xff]  }
  0x7c   :  { %590 = vmatpush1.bf16.msra.mxu0 %v2120_v29  ;;  %1220 = vmatpush1.bf16.msra.mxu1 %v2121_v6 }
  0x7d   :  { %591 = vmatprep.subr.bf16.mxu0 %v2244_v0  ;;  %1221 = vmatprep.subr.bf16.mxu1 %v2244_v0 }
  0x7f   :  { %492 = vmatmul.mubr.bf16.gmra.mrb[4].mxu0 %v2571_v49  ;;  %1124 = vmatmul.mubr.bf16.gmra.mrb[4].mxu1 %v2457_v24  ;;  %v2128_v24 = vld [vmem:[#allocation2 + $0xc8] sm:$0xff]  }
  0x80   :  { %592 = vmatpush1.bf16.msra.mxu0 %v2122_v50  ;;  %1222 = vmatpush1.bf16.msra.mxu1 %v2123_v51 }
  0x81   :  { %593 = vmatprep.subr.bf16.mxu0 %v2244_v0  ;;  %1223 = vmatprep.subr.bf16.mxu1 %v2244_v0 }
  0x82   :  { %1857 = vmatprep.mubr.msk.bf16.mxu0 %vm329_vm0, %v2412_v54  ;;  %1906 = vmatprep.mubr.msk.bf16.mxu1 %vm329_vm0, %v2412_v54  ;;  %v2131_v54 = vld [vmem:[#allocation5 + $0x120] sm:$0xff]  }
  0x84   :  { %594 = vmatpush1.bf16.msra.mxu0 %v2124_v52  ;;  %1224 = vmatpush1.bf16.msra.mxu1 %v2125_v16 }
  0x85   :  { %595 = vmatprep.subr.bf16.mxu0 %v2244_v0  ;;  %1225 = vmatprep.subr.bf16.mxu1 %v2244_v0 }
  0x88   :  { %596 = vmatpush1.bf16.msra.mxu0 %v2126_v22  ;;  %1226 = vmatpush1.bf16.msra.mxu1 %v2127_v56 }
  0x89   :  { %597 = vmatprep.subr.bf16.mxu0 %v2244_v0  ;;  %1227 = vmatprep.subr.bf16.mxu1 %v2244_v0 }
  0x8c   :  { %598 = vmatpush1.bf16.msra.mxu0 %v2128_v24  ;;  %1228 = vmatpush1.bf16.msra.mxu1 %v2129_v57 }
  0x8d   :  { %599 = vmatprep.subr.bf16.mxu0 %v2244_v0  ;;  %1229 = vmatprep.subr.bf16.mxu1 %v2244_v0 }
  0x90   :  { %600 = vmatpush1.bf16.msra.mxu0 %v2130_v17  ;;  %1230 = vmatpush1.bf16.msra.mxu1 %v2131_v54 }
  0x91   :  { %601 = vmatprep.subr.bf16.mxu0 %v2244_v0  ;;  %1231 = vmatprep.subr.bf16.mxu1 %v2244_v0 }
  0x94   :  { %602 = vmatpush1.bf16.msra.mxu0 %v2132_v61  ;;  %1232 = vmatpush1.bf16.msra.mxu1 %v2133_v3 }
  0x95   :  { %603 = vmatprep.subr.bf16.mxu0 %v2244_v0  ;;  %1233 = vmatprep.subr.bf16.mxu1 %v2244_v0 }
  0x98   :  { %604 = vmatpush1.bf16.msra.mxu0 %v2134_v4  ;;  %1234 = vmatpush1.bf16.msra.mxu1 %v2135_v7 }
  0x99   :  { %605 = vmatprep.subr.bf16.mxu0 %v2244_v0  ;;  %1235 = vmatprep.subr.bf16.mxu1 %v2244_v0 }
  0x9c   :  { %606 = vmatpush1.bf16.msra.mxu0 %v2136_v8  ;;  %1236 = vmatpush1.bf16.msra.mxu1 %v2137_v10 }
  0x9d   :  { %838 = vmatprep.subr.bf16.mxu0 %v2244_v0  ;;  %1357 = vmatprep.subr.bf16.mxu1 %v2244_v0 }
  0x9f   :  { %620 = vmatmul.mubr.bf16.vlgmr.msra.gmra.mrb[0].mxu0 %v2446_v15  ;;  %1250 = vmatmul.mubr.bf16.vlgmr.msra.gmra.mrb[0].mxu1 %v2446_v15  ;;  %v2144_v15 = vld [vmem:[#allocation5 + $0x68] sm:$0xff]  }
  0xa0   :  { %839 = vmatpush1.bf16.msra.mxu0 %v2138_v12  ;;  %1358 = vmatpush1.bf16.msra.mxu1 %v2139_v14 }
  0xa1   :  { %840 = vmatprep.subr.bf16.mxu0 %v2244_v0  ;;  %1359 = vmatprep.subr.bf16.mxu1 %v2244_v0 }
  0xa2   :  { %1858 = vmatprep.mubr.msk.bf16.mxu0 %vm329_vm0, %v2483_v47  ;;  %1907 = vmatprep.mubr.msk.bf16.mxu1 %vm329_vm0, %v2483_v47  ;;  %v2146_v47 = vld [vmem:[#allocation5 + $0x70] sm:$0xff]  }
  0xa4   :  { %841 = vmatpush1.bf16.msra.mxu0 %v2140_v19  ;;  %1360 = vmatpush1.bf16.msra.mxu1 %v2141_v21 }
  0xa5   :  { %842 = vmatprep.subr.bf16.mxu0 %v2244_v0  ;;  %1361 = vmatprep.subr.bf16.mxu1 %v2244_v0 }
  0xa7   :  { %628 = vmatmul.mubr.bf16.gmra.mrb[4].mxu0 %v2491_v53  ;;  %1258 = vmatmul.mubr.bf16.gmra.mrb[4].mxu1 %v2491_v53  ;;  %v2147_v53 = vld [vmem:[#allocation5 + $0x160] sm:$0xff]  }
  0xa8   :  { %843 = vmatpush1.bf16.msra.mxu0 %v2142_v23  ;;  %1362 = vmatpush1.bf16.msra.mxu1 %v2143_v28 }
  0xa9   :  { %844 = vmatprep.subr.bf16.mxu0 %v2244_v0  ;;  %1363 = vmatprep.subr.bf16.mxu1 %v2244_v0 }
  0xaa   :  { %1870 = vmatprep.mubr.msk.bf16.mxu0 %vm329_vm0, %v2465_v34  ;;  %1918 = vmatprep.mubr.msk.bf16.mxu1 %vm329_vm0, %v225_v18  ;;  %v2150_v34 = vld [vmem:[#allocation5 + $0x80] sm:$0xff]   ;;  %v2153_v18 = vld [vmem:[#allocation5 + $0x178] sm:$0xff]  }
  0xac   :  { %845 = vmatpush1.bf16.msra.mxu0 %v2144_v15  ;;  %1364 = vmatpush1.bf16.msra.mxu1 %v2145_v32 }
  0xad   :  { %846 = vmatprep.subr.bf16.mxu0 %v2244_v0  ;;  %1365 = vmatprep.subr.bf16.mxu1 %v2244_v0 }
  0xb0   :  { %847 = vmatpush1.bf16.msra.mxu0 %v2146_v47  ;;  %1366 = vmatpush1.bf16.msra.mxu1 %v2147_v53 }
  0xb1   :  { %848 = vmatprep.subr.bf16.mxu0 %v2244_v0  ;;  %1367 = vmatprep.subr.bf16.mxu1 %v2244_v0 }
  0xb4   :  { %849 = vmatpush1.bf16.msra.mxu0 %v2148_v35  ;;  %1368 = vmatpush1.bf16.msra.mxu1 %v2149_v36 }
  0xb5   :  { %850 = vmatprep.subr.bf16.mxu0 %v2244_v0  ;;  %1369 = vmatprep.subr.bf16.mxu1 %v2244_v0 }
  0xb8   :  { %851 = vmatpush1.bf16.msra.mxu0 %v2150_v34  ;;  %1370 = vmatpush1.bf16.msra.mxu1 %v2151_v55 }
  0xb9   :  { %852 = vmatprep.subr.bf16.mxu0 %v2244_v0  ;;  %1371 = vmatprep.subr.bf16.mxu1 %v2244_v0 }
  0xbc   :  { %853 = vmatpush1.bf16.msra.mxu0 %v2152_v60  ;;  %1372 = vmatpush1.bf16.msra.mxu1 %v2153_v18  ;;  %v662_v60 = vlaneseq }
  0xbd   :  { %854 = vmatprep.subr.bf16.mxu0 %v2244_v0  ;;  %1373 = vmatprep.subr.bf16.mxu1 %v2244_v0 }
  0xbe   :  { %v2677_v18 = vshrl.u32 %v662_v60, 7  ;;  %v1511_v60 = vld [vmem:[%s2906_s5 + $0x20] sm:$0xff] }
  0xc0   :  { %855 = vmatpush1.bf16.msra.mxu0 %v2154_v37  ;;  %1374 = vmatpush1.bf16.msra.mxu1 %v2155_v38  ;;  %v2680_v38 = vsub.s32 0, %v2677_v18 }
  0xc1   :  { %856 = vmatprep.subr.bf16.mxu0 %v2244_v0  ;;  %1375 = vmatprep.subr.bf16.mxu1 %v2244_v0 }
  0xc4   :  { %857 = vmatpush1.bf16.msra.mxu0 %v2156_v39  ;;  %1376 = vmatpush1.bf16.msra.mxu1 %v2157_v30 }
  0xc7   :  { %871 = vmatmul.mubr.bf16.vlgmr.msra.gmra.mrb[8].mxu0 %v2552_v42  ;;  %1390 = vmatmul.mubr.bf16.vlgmr.msra.gmra.mrb[0].mxu1 %v224_v9 }
  0xc8   :  { %1871 = vmatprep.mubr.msk.bf16.mxu0 %vm329_vm0, %v2561_v48  ;;  %1919 = vmatprep.mubr.msk.bf16.mxu1 %vm329_vm0, %v227_v20 }
  0xcf   :  { %879 = vmatmul.mubr.bf16.gmra.mrb[12].mxu0 %v2571_v49  ;;  %1398 = vmatmul.mubr.bf16.gmra.mrb[4].mxu1 %v226_v33 }
 0x172   :  { %v2645_v0 = vpop.f32.mrb[0].mxu0 }
 0x173   :  { %v623_v31 = vpop.f32.mrb[1].mxu0 }
 0x174   :  { %v2647_v40 = vpop.f32.mrb[2].mxu0 }
 0x175   :  { %v640_v62 = vadd.f32 %v2647_v40, %v2645_v0  ;;  %v626_v5 = vpop.f32.mrb[3].mxu0 }
 0x17a   :  { %v2651_v9 = vpop.f32.mrb[4].mxu0 }
 0x17b   :  { %v641_v11 = vadd.f32 %v640_v62, %v2651_v9  ;;  %v631_v13 = vpop.f32.mrb[5].mxu0 }
 0x17c   :  { %v2654_v20 = vpop.f32.mrb[6].mxu0 }
 0x17d   :  { %v642_v41 = vadd.f32 %v641_v11, %v2654_v20  ;;  %v634_v26 = vpop.f32.mrb[7].mxu0 }
 0x17f   :  { %v643_v27 = vrot.slane %v642_v41, 4 }
 0x181   :  { %v644_v33 = vadd.f32 %v643_v27, %v642_v41 }
 0x183   :  { %v645_v25 = vrot.slane %v644_v33, 2 }
 0x185   :  { %v646_v42 = vadd.f32 %v645_v25, %v644_v33 }
 0x187   :  { %v647_v43 = vrot.slane %v646_v42, 1 }
 0x189   :  { %v648_v58 = vadd.f32 %v647_v43, %v646_v42 }
 0x18b   :  { %649 = vrot.lane.b32.xlu0 %v648_v58, %s2241_s19 }
 0x19a   :  { %v872_v63 = vpop.f32.mrb[8].mxu0  ;;  %v1391_v1 = vpop.f32.mrb[0].mxu1 }
 0x19b   :  { %v874_v44 = vpop.f32.mrb[9].mxu0  ;;  %v2658_v45 = vadd.f32 %v1391_v1, %v872_v63  ;;  %v1393_v46 = vpop.f32.mrb[1].mxu1 }
 0x19c   :  { %v875_v48 = vpop.f32.mrb[10].mxu0  ;;  %v1394_v29 = vpop.f32.mrb[2].mxu1 }
 0x19d   :  { %v877_v59 = vpop.f32.mrb[11].mxu0  ;;  %v2660_v2 = vadd.f32 %v1394_v29, %v875_v48  ;;  %v1396_v6 = vpop.f32.mrb[3].mxu1 }
 0x19f   :  { %v1410_v52 = vadd.f32 %v2660_v2, %v2658_v45 }
 0x1a2   :  { %v880_v49 = vpop.f32.mrb[12].mxu0  ;;  %v1399_v50 = vpop.f32.mrb[4].mxu1 }
 0x1a3   :  { %v882_v51 = vpop.f32.mrb[13].mxu0  ;;  %v2664_v16 = vadd.f32 %v1399_v50, %v880_v49  ;;  %v1401_v22 = vpop.f32.mrb[5].mxu1 }
 0x1a4   :  { %v883_v56 = vpop.f32.mrb[14].mxu0  ;;  %v1402_v24 = vpop.f32.mrb[6].mxu1 }
 0x1a5   :  { %v885_v57 = vpop.f32.mrb[15].mxu0  ;;  %v1411_v17 = vadd.f32 %v2664_v16, %v1410_v52  ;;  %v2667_v54 = vadd.f32 %v1402_v24, %v883_v56  ;;  %v1404_v61 = vpop.f32.mrb[7].mxu1 }
 0x1a7   :  { %v1412_v3 = vadd.f32 %v2667_v54, %v1411_v17 }
 0x1a9   :  { %v1413_v4 = vrot.slane %v1412_v3, 4 }
 0x1ab   :  { %v1414_v7 = vadd.f32 %v1413_v4, %v1412_v3 }
 0x1ad   :  { %v1415_v8 = vrot.slane %v1414_v7, 2 }
 0x1af   :  { %v1416_v10 = vadd.f32 %v1415_v8, %v1414_v7 }
 0x1b1   :  { %v1417_v12 = vrot.slane %v1416_v10, 1 }
 0x1b3   :  { %v1418_v14 = vadd.f32 %v1417_v12, %v1416_v10 }
 0x1b5   :  { %1419 = vrot.lane.b32.xlu0 %v1418_v14, %s2241_s19 }
 0x1fd   :  { %v650_v19 = vpop.permute.xlu0 %649 }
 0x1fe   :  { %v651_v21 = vadd.f32 %v650_v19, %v648_v58 }
 0x200   :  { %652 = vrot.lane.b32.xlu1 %v651_v21, %s2245_s0 }
 0x227   :  { %v1420_v23 = vpop.permute.xlu0 %1419 }
 0x228   :  { %v1421_v28 = vadd.f32 %v1420_v23, %v1418_v14 }
 0x22a   :  { %1422 = vrot.lane.b32.xlu1 %v1421_v28, %s2245_s0 }
 0x272   :  { %v653_v15 = vpop.permute.xlu1 %652 }
 0x273   :  { %v654_v32 = vadd.f32 %v653_v15, %v651_v21  ;;  %v1507_v15 = vld [vmem:[%s2906_s5] sm:$0xff] }
 0x275   :  { %655 = vrot.lane.b32.xlu0 %v654_v32, %s2246_s25 }
 0x29c   :  { %v1423_v47 = vpop.permute.xlu1 %1422 }
 0x29d   :  { %v1424_v53 = vadd.f32 %v1423_v47, %v1421_v28 }
 0x29f   :  { %1425 = vrot.lane.b32.xlu1 %v1424_v53, %s2246_s25 }
 0x2e7   :  { %v656_v35 = vpop.permute.xlu0 %655 }
 0x2e8   :  { %v657_v36 = vadd.f32 %v656_v35, %v654_v32  ;;  %v1508_v32 = vld [vmem:[%s2906_s5 + $0x8] sm:$0xff]  ;;  %v2248_v35 = vmov 0.0|0.0  }
 0x2e9   :  { %1993 = vmatprep.subr.bf16.mxu1 %v2248_v35 }
 0x2ea   :  { %658 = vrot.lane.b32.xlu0 %v657_v36, %s2247_s26 }
 0x311   :  { %v1426_v34 = vpop.permute.xlu1 %1425 }
 0x312   :  { %v1427_v55 = vadd.f32 %v1426_v34, %v1424_v53  ;;  %v1994_v53 = vpack.c.bf16 %v1508_v32, %v1507_v15  ;;  %v1510_v34 = vld [vmem:[%s2906_s5 + $0x18] sm:$0xff] }
 0x314   :  { %1428 = vrot.lane.b32.xlu1 %v1427_v55, %s2247_s26  ;;  %1995 = vmatpush3.bf16.msra.mxu1 %v1994_v53  ;;  %v1920_v53 = vld [vmem:[%s2905_s4 + $0x1] ss:$0 sm:$0xff] }
 0x315   :  { %1996 = vmatprep.subr.bf16.mxu1 %v2248_v35 }
 0x35c   :  { %v659_v37 = vpop.permute.xlu0 %658 }
 0x35d   :  { %v660_v39 = vadd.f32 %v659_v37, %v657_v36  ;;  %v1509_v36 = vld [vmem:[%s2906_s5 + $0x10] sm:$0xff]  ;;  %v1512_v37 = vld [vmem:[%s2906_s5 + $0x28] sm:$0xff] }
 0x35f   :  { %v661_v30 = vmul.f32 0.001953125, %v660_v39  ;;  %v2000_v39 = vpack.c.bf16 %v1512_v37, %v1511_v60 }
 0x361   :  { %v665_v31 = vrot.slane %v661_v30, %v2680_v38  ;;  %v1513_v30 = vld [vmem:[%s2906_s5 + $0x30] sm:$0xff] }
 0x363   :  { %v2684_v62 = vsub.f32 %v2645_v0, %v665_v31  ;;  %v2687_v5 = vsub.f32 %v2647_v40, %v665_v31  ;;  %v2690_v11 = vsub.f32 %v2651_v9, %v665_v31  ;;  %v2693_v13 = vsub.f32 %v2654_v20, %v665_v31  ;;  %v1514_v31 = vld [vmem:[%s2906_s5 + $0x38] sm:$0xff] }
 0x365   :  { %v670_v41 = vmul.f32 %v2684_v62, %v2684_v62  ;;  %v671_v26 = vmul.f32 %v2687_v5, %v2687_v5  ;;  %v672_v27 = vmul.f32 %v2690_v11, %v2690_v11  ;;  %v673_v40 = vmul.f32 %v2693_v13, %v2693_v13 }
 0x367   :  { %v674_v0 = vadd.f32 %v671_v26, %v670_v41  ;;  %v2003_v41 = vpack.c.bf16 %v1514_v31, %v1513_v30  ;;  %v1515_v26 = vld [vmem:[%s2906_s5 + $0x40] sm:$0xff] }
 0x369   :  { %v675_v33 = vadd.f32 %v674_v0, %v672_v27  ;;  %v1516_v27 = vld [vmem:[%s2906_s5 + $0x48] sm:$0xff]  ;;  %v2250_v0 = vmov 0.0  }
 0x36a   :  { %1980 = vmatprep.mubr.msk.f32.mxu1 %vm2249_vm5, %v2250_v0  ;;  %1983 = vmatprep.subr.mxu0 %v2250_v0 }
 0x36b   :  { %v676_v25 = vadd.f32 %v675_v33, %v673_v40  ;;  %v2006_v40 = vpack.c.bf16 %v1516_v27, %v1515_v26  ;;  %1985 = vmatprep.mubr.msk.f32.mxu0 %vm2249_vm5, %v2250_v0  ;;  %v1517_v33 = vld [vmem:[%s2906_s5 + $0x50] sm:$0xff] }
 0x36d   :  { %v677_v9 = vrot.slane %v676_v25, 4 }
 0x36f   :  { %v678_v42 = vadd.f32 %v677_v9, %v676_v25  ;;  %v1518_v25 = vld [vmem:[%s2906_s5 + $0x58] sm:$0xff] }
 0x370   :  { %v2009_v9 = vpack.c.bf16 %v1518_v25, %v1517_v33 }
 0x371   :  { %v679_v43 = vrot.slane %v678_v42, 2 }
 0x373   :  { %v680_v20 = vadd.f32 %v679_v43, %v678_v42  ;;  %v1519_v42 = vld [vmem:[%s2906_s5 + $0x60] sm:$0xff]  ;;  %v1520_v43 = vld [vmem:[%s2906_s5 + $0x68] sm:$0xff] }
 0x375   :  { %v681_v58 = vrot.slane %v680_v20, 1 }
 0x377   :  { %v682_v63 = vadd.f32 %v681_v58, %v680_v20  ;;  %v2012_v20 = vpack.c.bf16 %v1520_v43, %v1519_v42  ;;  %v1521_v58 = vld [vmem:[%s2906_s5 + $0x70] sm:$0xff] }
 0x379   :  { %683 = vrot.lane.b32.xlu0 %v682_v63, %s2241_s19 }
 0x386   :  { %v1429_v1 = vpop.permute.xlu1 %1428 }
 0x387   :  { %v1430_v44 = vadd.f32 %v1429_v1, %v1427_v55  ;;  %v1997_v55 = vpack.c.bf16 %v1510_v34, %v1509_v36 }
 0x389   :  { %v1431_v46 = vmul.f32 0.001953125, %v1430_v44  ;;  %1998 = vmatpush3.bf16.msra.mxu1 %v1997_v55  ;;  %v1600_v44 = vld [vmem:[%s2908_s7] sm:$0xff] }
 0x38a   :  { %1999 = vmatprep.subr.bf16.mxu1 %v2248_v35  ;;  %1984 = vmatpush3.msra.mxu0 %v1600_v44 }
 0x38b   :  { %v1435_v48 = vrot.slane %v1431_v46, %v2680_v38  ;;  %1988 = vmatprep.subr.mxu0 %v2250_v0 }
 0x38d   :  { %v2706_v29 = vsub.f32 %v2658_v45, %v1435_v48  ;;  %v2709_v59 = vsub.f32 %v2660_v2, %v1435_v48  ;;  %v2712_v6 = vsub.f32 %v2664_v16, %v1435_v48  ;;  %v2715_v49 = vsub.f32 %v2667_v54, %v1435_v48  ;;  %2001 = vmatpush3.bf16.msra.mxu1 %v2000_v39 }
 0x38e   :  { %2002 = vmatprep.subr.bf16.mxu1 %v2248_v35 }
 0x38f   :  { %v1440_v50 = vmul.f32 %v2706_v29, %v2706_v29  ;;  %v1441_v51 = vmul.f32 %v2709_v59, %v2709_v59  ;;  %v1442_v52 = vmul.f32 %v2712_v6, %v2712_v6  ;;  %v1443_v2 = vmul.f32 %v2715_v49, %v2715_v49 }
 0x391   :  { %v1444_v45 = vadd.f32 %v1441_v51, %v1440_v50  ;;  %2004 = vmatpush3.bf16.msra.mxu1 %v2003_v41 }
 0x392   :  { %2005 = vmatprep.subr.bf16.mxu1 %v2248_v35 }
 0x393   :  { %v1445_v22 = vadd.f32 %v1444_v45, %v1442_v52  ;;  %v696_v45 = vld [vmem:[%s2904_s3] sm:$0x1] }
 0x395   :  { %v1446_v56 = vadd.f32 %v1445_v22, %v1443_v2  ;;  %2007 = vmatpush3.bf16.msra.mxu1 %v2006_v40 }
 0x396   :  { %2008 = vmatprep.subr.bf16.mxu1 %v2248_v35 }
 0x397   :  { %v1447_v16 = vrot.slane %v1446_v56, 4 }
 0x399   :  { %v1448_v24 = vadd.f32 %v1447_v16, %v1446_v56  ;;  %2010 = vmatpush3.bf16.msra.mxu1 %v2009_v9 }
 0x39a   :  { %2011 = vmatprep.subr.bf16.mxu1 %v2248_v35 }
 0x39b   :  { %v1449_v57 = vrot.slane %v1448_v24, 2 }
 0x39d   :  { %v1450_v17 = vadd.f32 %v1449_v57, %v1448_v24  ;;  %2013 = vmatpush3.bf16.msra.mxu1 %v2012_v20  ;;  %v1859_v24 = vld [vmem:[%s2905_s4] ss:$0 sm:$0xff] }
 0x39e   :  { %2014 = vmatprep.subr.bf16.mxu1 %v2248_v35 }
 0x39f   :  { %v1451_v54 = vrot.slane %v1450_v17, 1 }
 0x3a1   :  { %v1452_v61 = vadd.f32 %v1451_v54, %v1450_v17 }
 0x3a3   :  { %1453 = vrot.lane.b32.xlu1 %v1452_v61, %s2241_s19 }
 0x3eb   :  { %v684_v3 = vpop.permute.xlu0 %683 }
 0x3ec   :  { %v685_v4 = vadd.f32 %v684_v3, %v682_v63  ;;  %v1522_v63 = vld [vmem:[%s2906_s5 + $0x78] sm:$0xff] }
 0x3ed   :  { %v2015_v1 = vpack.c.bf16 %v1522_v63, %v1521_v58 }
 0x3ee   :  { %686 = vrot.lane.b32.xlu0 %v685_v4, %s2245_s0 }
 0x3ef   :  { %2016 = vmatpush3.bf16.msra.mxu1 %v2015_v1 }
 0x415   :  { %v1454_v7 = vpop.permute.xlu1 %1453 }
 0x416   :  { %v1455_v8 = vadd.f32 %v1454_v7, %v1452_v61 }
 0x418   :  { %1456 = vrot.lane.b32.xlu1 %v1455_v8, %s2245_s0 }
 0x460   :  { %v687_v10 = vpop.permute.xlu0 %686 }
 0x461   :  { %v688_v12 = vadd.f32 %v687_v10, %v685_v4 }
 0x463   :  { %689 = vrot.lane.b32.xlu0 %v688_v12, %s2246_s25 }
 0x48a   :  { %v1457_v14 = vpop.permute.xlu1 %1456 }
 0x48b   :  { %v1458_v19 = vadd.f32 %v1457_v14, %v1455_v8 }
 0x48d   :  { %1459 = vrot.lane.b32.xlu1 %v1458_v19, %s2246_s25 }
 0x4d5   :  { %v690_v21 = vpop.permute.xlu0 %689 }
 0x4d6   :  { %v691_v23 = vadd.f32 %v690_v21, %v688_v12  ;;  %v1466_v21 = vld [vmem:[%s2904_s3 + $0x1] sm:$0x1] }
 0x4d8   :  { %692 = vrot.lane.b32.xlu0 %v691_v23, %s2247_s26 }
 0x4ff   :  { %v1460_v28 = vpop.permute.xlu1 %1459 }
 0x500   :  { %v2737_v47 = vadd.f32 %v1460_v28, %v1458_v19 }
 0x502   :  { %1462 = vrot.lane.b32.xlu1 %v2737_v47, %s2247_s26 }
 0x54a   :  { %v693_v46 = vpop.permute.xlu0 %692 }
 0x54b   :  { %v694_v48 = vadd.f32 %v693_v46, %v691_v23 }
 0x54d   :  { %v695_v50 = vmul.f32 0.001953125, %v694_v48 }
 0x54f   :  { %v697_v51 = vadd.f32 1e-05, %v695_v50 }
 0x551   :  { %2158 = vrsqrt.f32 %v697_v51 }
 0x55b   :  { %v2159_v52 = vpop.eup %2158 }
 0x55c   :  { %v699_v2 = vmul.f32 %v2159_v52, %v696_v45 }
 0x55e   :  { %v703_v22 = vrot.slane %v699_v2, %v2680_v38 }
 0x560   :  { %v704_v56 = vmul.f32 %v703_v22, %v2684_v62  ;;  %v705_v57 = vmul.f32 %v703_v22, %v2687_v5  ;;  %v706_v17 = vmul.f32 %v703_v22, %v2690_v11  ;;  %v707_v54 = vmul.f32 %v703_v22, %v2693_v13 }
 0x562   :  { %v2804_v4 = vadd.f32 %v1859_v24, %v704_v56  ;;  %v2806_v7 = vadd.f32 %v1859_v24, %v705_v57  ;;  %v2808_v8 = vadd.f32 %v1859_v24, %v706_v17  ;;  %v2810_v62 = vadd.f32 %v1859_v24, %v707_v54  ;;  %v1921_v17 = vld [vmem:[%s2907_s6] ss:$0 sm:$0xff] }
 0x564   :  { %v717_v12 = vmax.f32 %v2804_v4, 0.0  ;;  %v718_v5 = vmax.f32 %v2806_v7, 0.0  ;;  %v719_v11 = vmax.f32 %v2808_v8, 0.0  ;;  %v720_v13 = vmax.f32 %v2810_v62, 0.0 }
 0x566   :  { %v721_v14 = vadd.f32 %v718_v5, %v717_v12  ;;  %v728_v19 = vadd.f32 %v720_v13, %v719_v11 }
 0x568   :  { %v722_v28 = vrot.slane %v721_v14, 4  ;;  %v729_v15 = vrot.slane %v728_v19, 4 }
 0x56a   :  { %v723_v35 = vadd.f32 %v722_v28, %v721_v14  ;;  %v730_v36 = vadd.f32 %v729_v15, %v728_v19 }
 0x56c   :  { %v724_v26 = vrot.slane %v723_v35, 2  ;;  %v731_v27 = vrot.slane %v730_v36, 2 }
 0x56e   :  { %v725_v25 = vadd.f32 %v724_v26, %v723_v35  ;;  %v732_v9 = vadd.f32 %v731_v27, %v730_v36  ;;  %v1785_v26 = vsub.s32 1, %v2677_v18 }
 0x570   :  { %v726_v63 = vrot.slane %v725_v25, 1  ;;  %v733_v1 = vrot.slane %v732_v9, 1 }
 0x572   :  { %v727_v51 = vadd.f32 %v726_v63, %v725_v25  ;;  %v734_v52 = vadd.f32 %v733_v1, %v732_v9 }
 0x574   :  { %v1463_v16 = vpop.permute.xlu1 %1462 }
 0x575   :  { %v1464_v61 = vadd.f32 %v1463_v16, %v2737_v47  ;;  %v736_v16 = vsel %vm735_vm6, %v727_v51, %v734_v52 }
 0x577   :  { %v1465_v3 = vmul.f32 0.001953125, %v1464_v61 }
 0x579   :  { %v1467_v10 = vadd.f32 1e-05, %v1465_v3 }
 0x57b   :  { %2160 = vrsqrt.f32 %v1467_v10  ;;  %v1924_v10 = vld [vmem:[%s2908_s7 + $0x8] sm:$0xff]  ;;  %s2251_s7 = smov [#allocation7]  }
 0x585   :  { %v2161_v23 = vpop.eup %2160 }
 0x586   :  { %v1469_v32 = vmul.f32 %v2161_v23, %v1466_v21  ;;  %v1922_v21 = vld [vmem:[%s2909_s8] ss:$0 sm:$0xff]  ;;  %v1925_v23 = vld [vmem:[%s2909_s8 + $0x1] ss:$0 sm:$0xff]  ;;  %s1806_s8 = sshll.u32 %s2251_s7, 4  ;;  %s1807_s8 = int_to_ptr.vmem [resolvable:$true] %s1806_s8 }
 0x587   :  { %s2212_s19 = scalar_lea.vmem %s1807_s8, 512  ;;  %p2217_p3 = scmp.lt.s32.totalorder %s1807_s8, %s1807_s8 }
 0x588   :  { %v1473_v47 = vrot.slane %v1469_v32, %v2680_v38  ;;  %p2213_p2 = scmp.ne.s32.totalorder %s1807_s8, %s2212_s19  ;;  %p2218_p4 = scmp.lt.s32.totalorder %s2212_s19, %s2212_s19 }
 0x58a   :  { %v1474_v34 = vmul.f32 %v1473_v47, %v2706_v29  ;;  %v1475_v55 = vmul.f32 %v1473_v47, %v2709_v59  ;;  %v1476_v60 = vmul.f32 %v1473_v47, %v2712_v6  ;;  %v1477_v37 = vmul.f32 %v1473_v47, %v2715_v49  ;;  %p2219_p5 = por %p2218_p4, %p2217_p3 }
 0x58c   :  { %v2835_v39 = vadd.f32 %v1920_v53, %v1474_v34  ;;  %v2837_v30 = vadd.f32 %v1920_v53, %v1475_v55  ;;  %v2839_v31 = vadd.f32 %v1920_v53, %v1476_v60  ;;  %v2841_v41 = vadd.f32 %v1920_v53, %v1477_v37  ;;  %p2220_p6 = pnand %p2219_p5, %p2213_p2 }
 0x58e   :  { %v1487_v40 = vmax.f32 %v2835_v39, 0.0  ;;  %v1488_v29 = vmax.f32 %v2837_v30, 0.0  ;;  %v1489_v59 = vmax.f32 %v2839_v31, 0.0  ;;  %v1490_v6 = vmax.f32 %v2841_v41, 0.0 }
 0x590   :  { %v1491_v49 = vadd.f32 %v1488_v29, %v1487_v40  ;;  %v1498_v33 = vadd.f32 %v1490_v6, %v1489_v59 }
 0x592   :  { %v1492_v42 = vrot.slane %v1491_v49, 4  ;;  %v1499_v43 = vrot.slane %v1498_v33, 4 }
 0x594   :  { %v1493_v20 = vadd.f32 %v1492_v42, %v1491_v49  ;;  %v1500_v58 = vadd.f32 %v1499_v43, %v1498_v33 }
 0x596   :  { %v1494_v44 = vrot.slane %v1493_v20, 2  ;;  %v1501_v46 = vrot.slane %v1500_v58, 2 }
 0x598   :  { %v1495_v48 = vadd.f32 %v1494_v44, %v1493_v20  ;;  %v1502_v50 = vadd.f32 %v1501_v46, %v1500_v58 }
 0x59a   :  { %v1496_v45 = vrot.slane %v1495_v48, 1  ;;  %v1503_v2 = vrot.slane %v1502_v50, 1 }
 0x59c   :  { %v1497_v22 = vadd.f32 %v1496_v45, %v1495_v48  ;;  %v1504_v56 = vadd.f32 %v1503_v2, %v1502_v50 }
 0x59e   :  { %v1505_v24 = vsel %vm735_vm6, %v1497_v22, %v1504_v56 }
 0x59f   :  { %v1506_v57 = vadd.f32 %v1505_v24, %v736_v16 }
 0x5a1   :  { %1981 = vmatmul.mubr.f32.vlgmr.msra.gmra.mrb[8].mxu1 %v1506_v57 }
 0x674   :  { %v1596_v54 = vpop.f32.mrb[8].mxu1 }
 0x675   :  { %v1597_v61 = vadd.f32 %v1921_v17, %v1596_v54  ;;  %v1982_v3 = vpop.f32.mrb[9].mxu1 }
 0x677   :  { %1986 = vmatmul.mubr.msk.f32.vlgmr.msra.gmra.mrb[16].mxu0 %vm1606_vm7, %v1597_v61 }
 0x678   :  { %1989 = vmatpush3.msra.mxu0 %v1924_v10  ;;  %1990 = vmatprep.mubr.msk.f32.mxu0 %vm2249_vm5, %v2250_v0 }
 0x67b   :  { %1991 = vmatmul.mubr.msk.f32.vlgmr.msra.gmra.mrb[18].mxu0 %vm1606_vm7, %v1597_v61 }
 0x74a   :  { %v1676_v14 = vpop.f32.mrb[16].mxu0 }
 0x74b   :  { %v1987_v19 = vpop.f32.mrb[17].mxu0  ;;  %v1677_v15 = vadd.f32 %v1922_v21, %v1676_v14 }
 0x74e   :  { %v1753_v28 = vpop.f32.mrb[18].mxu0 }
 0x74f   :  { %v1754_v32 = vadd.f32 %v1925_v23, %v1753_v28  ;;  %v1992_v47 = vpop.f32.mrb[19].mxu0 }
 0x751   :  { %v1757_v53 = vmax.f32 %v1677_v15, %v1754_v32 }
 0x753   :  { %v1758_v35 = vsub.f32 %v1677_v15, %v1757_v53  ;;  %v1761_v36 = vsub.f32 %v1754_v32, %v1757_v53 }
 0x755   :  { %v1759_v34 = vmul.f32 1.442695, %v1758_v35  ;;  %v1762_v0 = vmul.f32 1.442695, %v1761_v36 }
 0x757   :  { %2162 = vpow2.f32 %v1759_v34 }
 0x758   :  { %2164 = vpow2.f32 %v1762_v0 }
 0x761   :  { %v2163_v55 = vpop.eup %2162 }
 0x762   :  { %v2165_v60 = vpop.eup %2164 }
 0x763   :  { %v1764_v37 = vadd.f32 %v2165_v60, %v2163_v55 }
 0x765   :  { %2166 = vrcp.f32 %v1764_v37 }
 0x76f   :  { %v2167_v27 = vpop.eup %2166 }
 0x770   :  { %v1767_v49 = vmul.f32 %v2167_v27, %v2163_v55  ;;  %v1768_v33 = vmul.f32 %v2167_v27, %v2165_v60 }
 0x772   :  { %v1772_v25 = vrot.slane %v1767_v49, %v2680_v38  ;;  %v1778_v9 = vrot.slane %v1768_v33, %v2680_v38  ;;  %v1786_v42 = vrot.slane %v1767_v49, %v1785_v26  ;;  %v1792_v43 = vrot.slane %v1768_v33, %v1785_v26 }
 0x774   :  { %v1779_v20 = vmul.f32 %v1778_v9, %v1487_v40  ;;  %v1780_v58 = vmul.f32 %v1778_v9, %v1488_v29  ;;  %v1793_v63 = vmul.f32 %v1792_v43, %v1489_v59  ;;  %v1794_v18 = vmul.f32 %v1792_v43, %v1490_v6 }
 0x775   :  { %v1773_v1 = vmul.f32 %v1772_v25, %v717_v12  ;;  %v1774_v38 = vmul.f32 %v1772_v25, %v718_v5  ;;  %v1787_v39 = vmul.f32 %v1786_v42, %v719_v11  ;;  %v1788_v30 = vmul.f32 %v1786_v42, %v720_v13 }
 0x777   :  { %v1781_v40 = vadd.f32 %v1779_v20, %v1773_v1  ;;  %v1782_v31 = vadd.f32 %v1780_v58, %v1774_v38  ;;  %v1795_v29 = vadd.f32 %v1793_v63, %v1787_v39  ;;  %v1796_v59 = vadd.f32 %v1794_v18, %v1788_v30 }
 0x779   :  { %1797 = vst [vmem:[#allocation7] sm:$0xff] %v1781_v40  ;;  %1798 = vst [vmem:[#allocation7 + $0x8] sm:$0xff] %v1782_v31 }
 0x77a   :  { %1799 = vst [vmem:[#allocation7 + $0x10] sm:$0xff] %v1795_v29  ;;  %1800 = vst [vmem:[#allocation7 + $0x18] sm:$0xff] %v1796_v59 }
 0x77b   :  { %2223 = shalt.err (!%p2220_p6)
}
 0x77c   :  { %s2224_s29 = scalar_lea.hbm %s2910_s9, 512 }
 0x77d   :  { %p2225_p7 = scmp.ne.s32.totalorder %s2910_s9, %s2224_s29  ;;  %p2228_p8 = scmp.lt.u32.totalorder %s2224_s29, %s2910_s9 }
 0x77f   :  { %p2230_p9 = pnand %p2228_p8, %p2225_p7 }
 0x781   :  { %2233 = shalt.err (!%p2230_p9)
}
 0x782   :  { %s2252_s10 = smov 128  }
 0x783   :  { %1812 = dma.vmem_to_hbm [thread:$0]  %s1807_s8, 512, %s2910_s9, [#allocation4], %s2252_s10, %s2252_s10, %s2247_s26  }
 0x784   :  { %2238 = dma.done.wait [#allocation4], 512  }
 0x785   :  { %2239 = vsyncadd [#allocation4], 4294966784 }
 0x786   :  { %1816 = vsyncpa [#allocation3], 1 }
 0x787   :  { %1817 = vsyncpa [#allocation6], 1 }
 0x788   :  { %1818 = vsyncpa [#allocation4], 1 }

</bundles_post_ra>
